<compile_context>
chip_gen: v6e
topology: v6e:2x2x1
jax: 0.10.0
libtpu: 0.0.40
codegen_flags: <defaults>
</compile_context>

<pallas_src>
import functools

import jax
import jax.numpy as jnp
from jax.experimental import pallas as pl
from jax.experimental.pallas import tpu as pltpu

EPS = 1e-5  # nn.BatchNorm2d default


# ---------------------------------------------------------------------------
# pltpu.roll sign-convention probe (runs once, eagerly, outside any jit).
# ---------------------------------------------------------------------------
_ROLL_MODE = None


def _get_roll_mode():
    """How to express "result[:, j] = x[:, (j + s) % n]" with pltpu.roll.

      "np"   : pltpu.roll matches jnp.roll           -> shift = (-s) % n
      "inv"  : pltpu.roll shifts the opposite way    -> shift = s % n
      "slice": roll unavailable -> concat of two lane slices (always correct)
    """
    global _ROLL_MODE
    if _ROLL_MODE is not None:
        return _ROLL_MODE
    mode = "slice"
    try:
        def probe(x_ref, o_ref):
            o_ref[...] = pltpu.roll(x_ref[...], 1, axis=1)

        x = jnp.broadcast_to(jnp.arange(256, dtype=jnp.float32),
                             (8, 256)).astype(jnp.bfloat16)
        y = pl.pallas_call(
            probe, out_shape=jax.ShapeDtypeStruct((8, 256), jnp.bfloat16))(x)
        v = float(y[0, 0])
        if v == 255.0:
            mode = "np"
        elif v == 1.0:
            mode = "inv"
    except Exception:  # lowering/tracing failure -> safe fallback
        mode = "slice"
    _ROLL_MODE = mode
    return mode


# ---------------------------------------------------------------------------
# Fused kernel.  Activations: (N, C, H*W), H*W on the 128-lane axis.
# ---------------------------------------------------------------------------
def bottleneck_kernel(x_ref, w_ref, bn_ref, o_ref, patch_ref, *,
                      nbatch, cin, cp, cout, hdim, wdim, roll_mode):
    hw = hdim * wdim
    inv_m = 1.0 / (nbatch * hw)

    # --- packed parameters (1 weight DMA + 1 BN DMA instead of 12 inputs) ---
    o2 = cin
    o3 = cin + 9 * cp
    w1 = w_ref[0:cp, 0:cin]              # (cp, cin)    bf16
    w2 = w_ref[0:cp, o2:o3]              # (cp, 9*cp)   bf16
    w3 = w_ref[0:cout, o3:o3 + cp]       # (cout, cp)   bf16
    g1, b1 = bn_ref[0:cp, 0:1], bn_ref[0:cp, 1:2]
    g2, b2 = bn_ref[0:cp, 2:3], bn_ref[0:cp, 3:4]
    g3, b3 = bn_ref[0:cout, 4:5], bn_ref[0:cout, 5:6]

    # --- 3x3 halo border masks, built once from an in-kernel lane iota ------
    lane = jax.lax.broadcasted_iota(jnp.int32, (1, hw), 1)
    if (wdim & (wdim - 1)) == 0:
        wcoord = jnp.bitwise_and(lane, wdim - 1)
    else:
        wcoord = lane % wdim  # TODO(synk): non power-of-two W relies on int vector mod
    row_ok = {-1: lane >= wdim, 0: None, 1: lane < (hdim - 1) * wdim}
    col_ok = {-1: wcoord >= 1, 0: None, 1: wcoord <= wdim - 2}

    def mm(a, b):  # bf16 operands on the MXU, f32 accumulation
        return jnp.dot(a, b, preferred_element_type=jnp.float32)

    def bn_scale_shift(ys, g, b):
        # Training-mode batch stats in one pass (E[x], E[x^2]), folded into a
        # single scale/shift FMA; rsqrt rides the EUP slot.
        s1 = sum(jnp.sum(y, axis=1, keepdims=True) for y in ys)
        s2 = sum(jnp.sum(y * y, axis=1, keepdims=True) for y in ys)
        mean = s1 * inv_m
        var = jnp.maximum(s2 * inv_m - mean * mean, 0.0)
        scale = g * jax.lax.rsqrt(var + EPS)
        return scale, b - mean * scale

    def shift_lanes(v, s):
        # result[:, j] = v[:, (j + s) % hw]
        if s == 0:
            return v
        if roll_mode == "np":
            return pltpu.roll(v, (-s) % hw, axis=1)
        if roll_mode == "inv":
            return pltpu.roll(v, s % hw, axis=1)
        k = s % hw  # fallback: two lane slices + concat
        return jnp.concatenate([v[:, k:], v[:, :k]], axis=1)

    # --- conv1 (1x1) + bn1 + relu -------------------------------------------
    xs = [x_ref[n] for n in range(nbatch)]                    # (cin, hw) f32
    h1 = [mm(w1, x.astype(jnp.bfloat16)) for x in xs]         # (cp, hw)  f32
    sc, sh = bn_scale_shift(h1, g1, b1)
    h1 = [jnp.maximum(y * sc + sh, 0.0).astype(jnp.bfloat16) for y in h1]

    # --- conv2 (3x3, pad=1) + bn2 + relu ------------------------------------
    # Shifted-lane im2col into a 16-sublane-aligned bf16 VMEM scratch; each
    # tap = one XLU roll + one select + one aligned store.
    for n in range(nbatch):
        for dy in range(3):
            for dx in range(3):
                t = dy * 3 + dx
                tap = shift_lanes(h1[n], (dy - 1) * wdim + (dx - 1))
                rmask, cmask = row_ok[dy - 1], col_ok[dx - 1]
                if rmask is not None and cmask is not None:
                    valid = rmask & cmask
                elif rmask is not None:
                    valid = rmask
                else:
                    valid = cmask
                if valid is not None:
                    tap = jnp.where(valid, tap, jnp.zeros_like(tap))
                patch_ref[n, t * cp:(t + 1) * cp, :] = tap
    h2 = [mm(w2, patch_ref[n]) for n in range(nbatch)]        # (cp, hw) f32
    sc, sh = bn_scale_shift(h2, g2, b2)
    h2 = [jnp.maximum(y * sc + sh, 0.0).astype(jnp.bfloat16) for y in h2]

    # --- conv3 (1x1) + bn3 + identity add + relu ----------------------------
    y3 = [mm(w3, h) for h in h2]                              # (cout, hw) f32
    sc, sh = bn_scale_shift(y3, g3, b3)
    for n in range(nbatch):
        o_ref[n] = jnp.maximum(y3[n] * sc + sh + xs[n], 0.0)


# ---------------------------------------------------------------------------
# Wrapper (layout plumbing only: free reshapes, tiny weight-side packing)
# ---------------------------------------------------------------------------
def _round_up(v, m):
    return ((v + m - 1) // m) * m


@functools.lru_cache(maxsize=None)
def _build_forward(nbatch, c_in, c_mid, h, w):
    roll_mode = _get_roll_mode()          # eager probe, outside any jit trace
    c_out = 4 * c_mid
    if c_in != c_out:
        raise ValueError("identity residual requires in_channel == out_channel*4")
    # Pad mid channels to the bf16 sublane tile (16) so every im2col tap
    # block, weight slice and scratch store is tile-aligned.
    cp = _round_up(c_mid, 16)
    hw = h * w
    rows = max(cp, c_out)
    cols = c_in + 9 * cp + cp

    kernel = functools.partial(
        bottleneck_kernel, nbatch=nbatch, cin=c_in, cp=cp, cout=c_out,
        hdim=h, wdim=w, roll_mode=roll_mode)

    fused = pl.pallas_call(
        kernel,
        out_shape=jax.ShapeDtypeStruct((nbatch, c_out, hw), jnp.float32),
        in_specs=[
            pl.BlockSpec((nbatch, c_in, hw), lambda: (0, 0, 0)),   # x
            pl.BlockSpec((rows, cols), lambda: (0, 0)),            # packed bf16 weights
            pl.BlockSpec((rows, 6), lambda: (0, 0)),               # packed BN gamma/beta
        ],
        out_specs=pl.BlockSpec((nbatch, c_out, hw), lambda: (0, 0, 0)),
        scratch_shapes=[pltpu.VMEM((nbatch, 9 * cp, hw), jnp.bfloat16)],
    )
    # TODO(synk): for non-toy shapes add a grid over H*W with
    # dimension_semantics=("parallel",) (v7x has 2 TensorCores) and restructure
    # BN as a two-pass reduction; here the whole problem fits one VMEM block.

    @jax.jit
    def fwd(x, params):
        w1 = params["conv1_w"].reshape(c_mid, c_in)
        w2 = jnp.transpose(params["conv2_w"], (0, 2, 3, 1)).reshape(c_mid, 9, c_mid)
        w2 = jnp.pad(w2, ((0, 0), (0, 0), (0, cp - c_mid))).reshape(c_mid, 9 * cp)
        w3 = params["conv3_w"].reshape(c_out, c_mid)

        wpack = jnp.zeros((rows, cols), jnp.float32)
        wpack = wpack.at[:c_mid, :c_in].set(w1)
        wpack = wpack.at[:c_mid, c_in:c_in + 9 * cp].set(w2)
        wpack = wpack.at[:c_out, c_in + 9 * cp:c_in + 9 * cp + c_mid].set(w3)
        wpack = wpack.astype(jnp.bfloat16)

        bnpack = jnp.zeros((rows, 6), jnp.float32)
        bnpack = bnpack.at[:c_mid, 0].set(params["bn1_g"])
        bnpack = bnpack.at[:c_mid, 1].set(params["bn1_b"])
        bnpack = bnpack.at[:c_mid, 2].set(params["bn2_g"])
        bnpack = bnpack.at[:c_mid, 3].set(params["bn2_b"])
        bnpack = bnpack.at[:c_out, 4].set(params["bn3_g"])
        bnpack = bnpack.at[:c_out, 5].set(params["bn3_b"])

        out = fused(x.reshape(nbatch, c_in, hw), wpack, bnpack)
        return out.reshape(nbatch, c_out, h, w)

    return fwd


def bottleneck_forward(x, params):
    n, c_in, h, w = x.shape
    c_mid = params["conv1_w"].shape[0]
    return _build_forward(n, c_in, c_mid, h, w)(x, params)


# ---------------------------------------------------------------------------
# Parameters (PyTorch-native layouts) and precision-matched JAX reference
# ---------------------------------------------------------------------------
def init_params(key, c_in, c_mid, expansion=4):
    c_out = c_mid * expansion
    ks = jax.random.split(key, 9)
    f32 = jnp.float32
    return {
        "conv1_w": 0.1 * jax.random.normal(ks[0], (c_mid, c_in, 1, 1), f32),
        "bn1_g": 1.0 + 0.1 * jax.random.normal(ks[1], (c_mid,), f32),
        "bn1_b": 0.1 * jax.random.normal(ks[2], (c_mid,), f32),
        "conv2_w": 0.1 * jax.random.normal(ks[3], (c_mid, c_mid, 3, 3), f32),
        "bn2_g": 1.0 + 0.1 * jax.random.normal(ks[4], (c_mid,), f32),
        "bn2_b": 0.1 * jax.random.normal(ks[5], (c_mid,), f32),
        "conv3_w": 0.1 * jax.random.normal(ks[6], (c_out, c_mid, 1, 1), f32),
        "bn3_g": 1.0 + 0.1 * jax.random.normal(ks[7], (c_out,), f32),
        "bn3_b": 0.1 * jax.random.normal(ks[8], (c_out,), f32),
    }
    # TODO(synk): running_mean / running_var buffer updates (module state) are
    # not modeled; only the training-mode forward output is produced.


def bottleneck_reference(x, p, conv_dtype=jnp.bfloat16):
    """Pure-JAX reference mirroring the kernel precision (bf16 conv operands,
    f32 accumulation, f32 BN) so a tight tolerance can be used."""
    def conv(y, wgt, pad):
        return jax.lax.conv_general_dilated(
            y.astype(conv_dtype), wgt.astype(conv_dtype),
            window_strides=(1, 1), padding=pad,
            dimension_numbers=("NCHW", "OIHW", "NCHW"),
            preferred_element_type=jnp.float32)

    def bn(y, g, b):
        mean = jnp.mean(y, axis=(0, 2, 3), keepdims=True)
        var = jnp.mean((y - mean) ** 2, axis=(0, 2, 3), keepdims=True)
        return ((y - mean) * jax.lax.rsqrt(var + EPS)
                * g.reshape(1, -1, 1, 1) + b.reshape(1, -1, 1, 1))

    out = jax.nn.relu(bn(conv(x, p["conv1_w"], [(0, 0), (0, 0)]), p["bn1_g"], p["bn1_b"]))
    out = jax.nn.relu(bn(conv(out, p["conv2_w"], [(1, 1), (1, 1)]), p["bn2_g"], p["bn2_b"]))
    out = bn(conv(out, p["conv3_w"], [(0, 0), (0, 0)]), p["bn3_g"], p["bn3_b"])
    return jax.nn.relu(out + x)


if __name__ == "__main__":
    key = jax.random.PRNGKey(0)
    k_x, k_p = jax.random.split(key)

    # Bottleneck(in_channel=16, out_channel=4): identity add requires
    # in_channel == out_channel * expansion (downsample=None, stride=1).
    N, C_IN, H, W = 2, 16, 16, 16
    C_MID = 4

    x = jax.random.normal(k_x, (N, C_IN, H, W), jnp.float32)
    params = init_params(k_p, C_IN, C_MID)

    out = bottleneck_forward(x, params)
    jax.block_until_ready(out)

    assert out.shape == (N, C_MID * 4, H, W)
    assert bool(jnp.all(jnp.isfinite(out)))
    assert bool(jnp.all(out >= 0.0))                 # final ReLU

    # Reference mirrors the kernel's bf16-operand matmuls, so the tolerance is
    # tight enough to catch halo/roll indexing bugs (those produce O(1) errors).
    ref = bottleneck_reference(x, params)
    max_err = float(jnp.max(jnp.abs(out - ref)))
    assert bool(jnp.allclose(out, ref, rtol=5e-2, atol=5e-2)), \
        f"mismatch vs bf16 reference, max |err| = {max_err}"
    print("KERNEL_OK")
</pallas_src>

<mosaic_0001>
module attributes {stable_mosaic.version = 11 : i64} {
  func.func @probe(%arg0: memref<8x256xbf16, #tpu.memory_space<vmem>>, %arg1: memref<8x256xbf16, #tpu.memory_space<vmem>>) attributes {dimension_semantics = [], scalar_prefetch = 0 : i64, scratch_operands = 0 : i64, tpu.core_type = #tpu.core_type<tc>} {
    %c0 = arith.constant 0 : index
    %c0_0 = arith.constant 0 : index
    %0 = vector.load %arg0[%c0, %c0_0] : memref<8x256xbf16, #tpu.memory_space<vmem>>, vector<8x256xbf16>
    %c1_i32 = arith.constant 1 : i32
    %1 = tpu.dynamic_rotate %0 by %c1_i32 dim 1 : vector<8x256xbf16>, i32 -> vector<8x256xbf16>
    %c0_1 = arith.constant 0 : index
    %c0_2 = arith.constant 0 : index
    %2 = vector.load %arg1[%c0_1, %c0_2] : memref<8x256xbf16, #tpu.memory_space<vmem>>, vector<8x256xbf16>
    tpu.vector_store %arg1[%c0_1, %c0_2], %1 {strides = array<i32>} : memref<8x256xbf16, #tpu.memory_space<vmem>>, vector<8x256xbf16>,
    return
  }
}

module attributes {stable_mosaic.version = 11 : i64} {
  func.func @bottleneck_kernel(%arg0: memref<2x16x256xf32, #tpu.memory_space<vmem>>, %arg1: memref<16x176xbf16, #tpu.memory_space<vmem>>, %arg2: memref<16x6xf32, #tpu.memory_space<vmem>>, %arg3: memref<2x16x256xf32, #tpu.memory_space<vmem>>, %arg4: memref<2x144x256xbf16, #tpu.memory_space<vmem>>) attributes {dimension_semantics = [], scalar_prefetch = 0 : i64, scratch_operands = 1 : i64, tpu.core_type = #tpu.core_type<tc>} {
    %c0 = arith.constant 0 : index
    %c0_0 = arith.constant 0 : index
    %0 = vector.load %arg1[%c0, %c0_0] : memref<16x176xbf16, #tpu.memory_space<vmem>>, vector<16x16xbf16>
    %c0_1 = arith.constant 0 : index
    %c16 = arith.constant 16 : index
    %1 = vector.load %arg1[%c0_1, %c16] : memref<16x176xbf16, #tpu.memory_space<vmem>>, vector<16x144xbf16>
    %c0_2 = arith.constant 0 : index
    %c160 = arith.constant 160 : index
    %2 = vector.load %arg1[%c0_2, %c160] : memref<16x176xbf16, #tpu.memory_space<vmem>>, vector<16x16xbf16>
    %c0_3 = arith.constant 0 : index
    %c0_4 = arith.constant 0 : index
    %3 = vector.load %arg2[%c0_3, %c0_4] : memref<16x6xf32, #tpu.memory_space<vmem>>, vector<16x1xf32>
    %c0_5 = arith.constant 0 : index
    %c1 = arith.constant 1 : index
    %4 = vector.load %arg2[%c0_5, %c1] : memref<16x6xf32, #tpu.memory_space<vmem>>, vector<16x1xf32>
    %c0_6 = arith.constant 0 : index
    %c2 = arith.constant 2 : index
    %5 = vector.load %arg2[%c0_6, %c2] : memref<16x6xf32, #tpu.memory_space<vmem>>, vector<16x1xf32>
    %c0_7 = arith.constant 0 : index
    %c3 = arith.constant 3 : index
    %6 = vector.load %arg2[%c0_7, %c3] : memref<16x6xf32, #tpu.memory_space<vmem>>, vector<16x1xf32>
    %c0_8 = arith.constant 0 : index
    %c4 = arith.constant 4 : index
    %7 = vector.load %arg2[%c0_8, %c4] : memref<16x6xf32, #tpu.memory_space<vmem>>, vector<16x1xf32>
    %c0_9 = arith.constant 0 : index
    %c5 = arith.constant 5 : index
    %8 = vector.load %arg2[%c0_9, %c5] : memref<16x6xf32, #tpu.memory_space<vmem>>, vector<16x1xf32>
    %9 = tpu.iota {dimensions = array<i32: 1>} : vector<1x256xi32>
    %c15_i32 = arith.constant 15 : i32
    %10 = vector.broadcast %c15_i32 : i32 to vector<1x256xi32>
    %11 = arith.andi %9, %10 : vector<1x256xi32>
    %c16_i32 = arith.constant 16 : i32
    %12 = vector.broadcast %c16_i32 : i32 to vector<1x256xi32>
    %13 = arith.cmpi sge, %9, %12 : vector<1x256xi32>
    %c240_i32 = arith.constant 240 : i32
    %14 = vector.broadcast %c240_i32 : i32 to vector<1x256xi32>
    %15 = arith.cmpi slt, %9, %14 : vector<1x256xi32>
    %c1_i32 = arith.constant 1 : i32
    %16 = vector.broadcast %c1_i32 : i32 to vector<1x256xi32>
    %17 = arith.cmpi sge, %11, %16 : vector<1x256xi32>
    %c14_i32 = arith.constant 14 : i32
    %18 = vector.broadcast %c14_i32 : i32 to vector<1x256xi32>
    %19 = arith.cmpi sle, %11, %18 : vector<1x256xi32>
    %c0_10 = arith.constant 0 : index
    %c0_11 = arith.constant 0 : index
    %c0_12 = arith.constant 0 : index
    %20 = vector.load %arg0[%c0_10, %c0_11, %c0_12] : memref<2x16x256xf32, #tpu.memory_space<vmem>>, vector<1x16x256xf32>
    %21 = vector.shape_cast %20 : vector<1x16x256xf32> to vector<16x256xf32>
    %c1_13 = arith.constant 1 : index
    %c0_14 = arith.constant 0 : index
    %c0_15 = arith.constant 0 : index
    %22 = vector.load %arg0[%c1_13, %c0_14, %c0_15] : memref<2x16x256xf32, #tpu.memory_space<vmem>>, vector<1x16x256xf32>
    %23 = vector.shape_cast %22 : vector<1x16x256xf32> to vector<16x256xf32>
    %24 = arith.truncf %21 : vector<16x256xf32> to vector<16x256xbf16>
    %cst = arith.constant dense<0.000000e+00> : vector<16x256xf32>
    %25 = tpu.matmul %0, %24, %cst {dimension_numbers = #tpu.dot_dimension_numbers<[1], [0], [0], [1], [0, 0, 1, 1], [], []>} : vector<16x16xbf16>, vector<16x256xbf16>, vector<16x256xf32> -> vector<16x256xf32>
    %26 = arith.truncf %23 : vector<16x256xf32> to vector<16x256xbf16>
    %cst_16 = arith.constant dense<0.000000e+00> : vector<16x256xf32>
    %27 = tpu.matmul %0, %26, %cst_16 {dimension_numbers = #tpu.dot_dimension_numbers<[1], [0], [0], [1], [0, 0, 1, 1], [], []>} : vector<16x16xbf16>, vector<16x256xbf16>, vector<16x256xf32> -> vector<16x256xf32>
    %cst_17 = arith.constant dense<0.000000e+00> : vector<16xf32>
    %28 = vector.multi_reduction <add>, %25, %cst_17 [1] : vector<16x256xf32> to vector<16xf32>
    %29 = vector.shape_cast %28 : vector<16xf32> to vector<16x1xf32>
    %cst_18 = arith.constant 0.000000e+00 : f32
    %30 = vector.broadcast %cst_18 : f32 to vector<16x1xf32>
    %31 = arith.addf %30, %29 : vector<16x1xf32>
    %cst_19 = arith.constant dense<0.000000e+00> : vector<16xf32>
    %32 = vector.multi_reduction <add>, %27, %cst_19 [1] : vector<16x256xf32> to vector<16xf32>
    %33 = vector.shape_cast %32 : vector<16xf32> to vector<16x1xf32>
    %34 = arith.addf %31, %33 : vector<16x1xf32>
    %35 = arith.mulf %25, %25 : vector<16x256xf32>
    %cst_20 = arith.constant dense<0.000000e+00> : vector<16xf32>
    %36 = vector.multi_reduction <add>, %35, %cst_20 [1] : vector<16x256xf32> to vector<16xf32>
    %37 = vector.shape_cast %36 : vector<16xf32> to vector<16x1xf32>
    %cst_21 = arith.constant 0.000000e+00 : f32
    %38 = vector.broadcast %cst_21 : f32 to vector<16x1xf32>
    %39 = arith.addf %38, %37 : vector<16x1xf32>
    %40 = arith.mulf %27, %27 : vector<16x256xf32>
    %cst_22 = arith.constant dense<0.000000e+00> : vector<16xf32>
    %41 = vector.multi_reduction <add>, %40, %cst_22 [1] : vector<16x256xf32> to vector<16xf32>
    %42 = vector.shape_cast %41 : vector<16xf32> to vector<16x1xf32>
    %43 = arith.addf %39, %42 : vector<16x1xf32>
    %cst_23 = arith.constant 0.001953125 : f32
    %44 = vector.broadcast %cst_23 : f32 to vector<16x1xf32>
    %45 = arith.mulf %34, %44 : vector<16x1xf32>
    %cst_24 = arith.constant 0.001953125 : f32
    %46 = vector.broadcast %cst_24 : f32 to vector<16x1xf32>
    %47 = arith.mulf %43, %46 : vector<16x1xf32>
    %48 = arith.mulf %45, %45 : vector<16x1xf32>
    %49 = arith.subf %47, %48 : vector<16x1xf32>
    %cst_25 = arith.constant 0.000000e+00 : f32
    %50 = vector.broadcast %cst_25 : f32 to vector<16x1xf32>
    %51 = arith.maximumf %49, %50 : vector<16x1xf32>
    %cst_26 = arith.constant 9.99999974E-6 : f32
    %52 = vector.broadcast %cst_26 : f32 to vector<16x1xf32>
    %53 = arith.addf %51, %52 : vector<16x1xf32>
    %54 = math.rsqrt %53 : vector<16x1xf32>
    %55 = arith.mulf %3, %54 : vector<16x1xf32>
    %56 = arith.mulf %45, %55 : vector<16x1xf32>
    %57 = arith.subf %4, %56 : vector<16x1xf32>
    %58 = vector.broadcast %55 : vector<16x1xf32> to vector<16x256xf32>
    %59 = arith.mulf %25, %58 : vector<16x256xf32>
    %60 = vector.broadcast %57 : vector<16x1xf32> to vector<16x256xf32>
    %61 = arith.addf %59, %60 : vector<16x256xf32>
    %cst_27 = arith.constant 0.000000e+00 : f32
    %62 = vector.broadcast %cst_27 : f32 to vector<16x256xf32>
    %63 = arith.maximumf %61, %62 : vector<16x256xf32>
    %64 = arith.truncf %63 : vector<16x256xf32> to vector<16x256xbf16>
    %65 = vector.broadcast %55 : vector<16x1xf32> to vector<16x256xf32>
    %66 = arith.mulf %27, %65 : vector<16x256xf32>
    %67 = vector.broadcast %57 : vector<16x1xf32> to vector<16x256xf32>
    %68 = arith.addf %66, %67 : vector<16x256xf32>
    %cst_28 = arith.constant 0.000000e+00 : f32
    %69 = vector.broadcast %cst_28 : f32 to vector<16x256xf32>
    %70 = arith.maximumf %68, %69 : vector<16x256xf32>
    %71 = arith.truncf %70 : vector<16x256xf32> to vector<16x256xbf16>
    %72 = vector.extract_strided_slice %64 {offsets = [0, 239], sizes = [16, 17], strides = [1, 1]} : vector<16x256xbf16> to vector<16x17xbf16>
    %73 = vector.extract_strided_slice %64 {offsets = [0, 0], sizes = [16, 239], strides = [1, 1]} : vector<16x256xbf16> to vector<16x239xbf16>
    %74 = tpu.concatenate %72, %73 in 1 : vector<16x17xbf16>, vector<16x239xbf16> -> vector<16x256xbf16>
    %75 = arith.andi %13, %17 : vector<1x256xi1>
    %cst_29 = arith.constant 0.000000e+00 : bf16
    %76 = vector.broadcast %cst_29 : bf16 to vector<16x256xbf16>
    %77 = vector.shape_cast %75 : vector<1x256xi1> to vector<1x256xi1>
    %78 = vector.broadcast %77 : vector<1x256xi1> to vector<16x256xi1>
    %79 = arith.select %78, %74, %76 : vector<16x256xi1>, vector<16x256xbf16>
    %c0_30 = arith.constant 0 : index
    %c0_31 = arith.constant 0 : index
    %c0_32 = arith.constant 0 : index
    %80 = vector.load %arg4[%c0_30, %c0_31, %c0_32] : memref<2x144x256xbf16, #tpu.memory_space<vmem>>, vector<1x16x256xbf16>
    %81 = vector.shape_cast %80 : vector<1x16x256xbf16> to vector<16x256xbf16>
    %82 = vector.shape_cast %79 : vector<16x256xbf16> to vector<1x16x256xbf16>
    tpu.vector_store %arg4[%c0_30, %c0_31, %c0_32], %82 {strides = array<i32>} : memref<2x144x256xbf16, #tpu.memory_space<vmem>>, vector<1x16x256xbf16>,
    %83 = vector.extract_strided_slice %64 {offsets = [0, 240], sizes = [16, 16], strides = [1, 1]} : vector<16x256xbf16> to vector<16x16xbf16>
    %84 = vector.extract_strided_slice %64 {offsets = [0, 0], sizes = [16, 240], strides = [1, 1]} : vector<16x256xbf16> to vector<16x240xbf16>
    %85 = tpu.concatenate %83, %84 in 1 : vector<16x16xbf16>, vector<16x240xbf16> -> vector<16x256xbf16>
    %cst_33 = arith.constant 0.000000e+00 : bf16
    %86 = vector.broadcast %cst_33 : bf16 to vector<16x256xbf16>
    %87 = vector.shape_cast %13 : vector<1x256xi1> to vector<1x256xi1>
    %88 = vector.broadcast %87 : vector<1x256xi1> to vector<16x256xi1>
    %89 = arith.select %88, %85, %86 : vector<16x256xi1>, vector<16x256xbf16>
    %c0_34 = arith.constant 0 : index
    %c16_35 = arith.constant 16 : index
    %c0_36 = arith.constant 0 : index
    %90 = vector.load %arg4[%c0_34, %c16_35, %c0_36] : memref<2x144x256xbf16, #tpu.memory_space<vmem>>, vector<1x16x256xbf16>
    %91 = vector.shape_cast %90 : vector<1x16x256xbf16> to vector<16x256xbf16>
    %92 = vector.shape_cast %89 : vector<16x256xbf16> to vector<1x16x256xbf16>
    tpu.vector_store %arg4[%c0_34, %c16_35, %c0_36], %92 {strides = array<i32>} : memref<2x144x256xbf16, #tpu.memory_space<vmem>>, vector<1x16x256xbf16>,
    %93 = vector.extract_strided_slice %64 {offsets = [0, 241], sizes = [16, 15], strides = [1, 1]} : vector<16x256xbf16> to vector<16x15xbf16>
    %94 = vector.extract_strided_slice %64 {offsets = [0, 0], sizes = [16, 241], strides = [1, 1]} : vector<16x256xbf16> to vector<16x241xbf16>
    %95 = tpu.concatenate %93, %94 in 1 : vector<16x15xbf16>, vector<16x241xbf16> -> vector<16x256xbf16>
    %96 = arith.andi %13, %19 : vector<1x256xi1>
    %cst_37 = arith.constant 0.000000e+00 : bf16
    %97 = vector.broadcast %cst_37 : bf16 to vector<16x256xbf16>
    %98 = vector.shape_cast %96 : vector<1x256xi1> to vector<1x256xi1>
    %99 = vector.broadcast %98 : vector<1x256xi1> to vector<16x256xi1>
    %100 = arith.select %99, %95, %97 : vector<16x256xi1>, vector<16x256xbf16>
    %c0_38 = arith.constant 0 : index
    %c32 = arith.constant 32 : index
    %c0_39 = arith.constant 0 : index
    %101 = vector.load %arg4[%c0_38, %c32, %c0_39] : memref<2x144x256xbf16, #tpu.memory_space<vmem>>, vector<1x16x256xbf16>
    %102 = vector.shape_cast %101 : vector<1x16x256xbf16> to vector<16x256xbf16>
    %103 = vector.shape_cast %100 : vector<16x256xbf16> to vector<1x16x256xbf16>
    tpu.vector_store %arg4[%c0_38, %c32, %c0_39], %103 {strides = array<i32>} : memref<2x144x256xbf16, #tpu.memory_space<vmem>>, vector<1x16x256xbf16>,
    %104 = vector.extract_strided_slice %64 {offsets = [0, 255], sizes = [16, 1], strides = [1, 1]} : vector<16x256xbf16> to vector<16x1xbf16>
    %105 = vector.extract_strided_slice %64 {offsets = [0, 0], sizes = [16, 255], strides = [1, 1]} : vector<16x256xbf16> to vector<16x255xbf16>
    %106 = tpu.concatenate %104, %105 in 1 : vector<16x1xbf16>, vector<16x255xbf16> -> vector<16x256xbf16>
    %cst_40 = arith.constant 0.000000e+00 : bf16
    %107 = vector.broadcast %cst_40 : bf16 to vector<16x256xbf16>
    %108 = vector.shape_cast %17 : vector<1x256xi1> to vector<1x256xi1>
    %109 = vector.broadcast %108 : vector<1x256xi1> to vector<16x256xi1>
    %110 = arith.select %109, %106, %107 : vector<16x256xi1>, vector<16x256xbf16>
    %c0_41 = arith.constant 0 : index
    %c48 = arith.constant 48 : index
    %c0_42 = arith.constant 0 : index
    %111 = vector.load %arg4[%c0_41, %c48, %c0_42] : memref<2x144x256xbf16, #tpu.memory_space<vmem>>, vector<1x16x256xbf16>
    %112 = vector.shape_cast %111 : vector<1x16x256xbf16> to vector<16x256xbf16>
    %113 = vector.shape_cast %110 : vector<16x256xbf16> to vector<1x16x256xbf16>
    tpu.vector_store %arg4[%c0_41, %c48, %c0_42], %113 {strides = array<i32>} : memref<2x144x256xbf16, #tpu.memory_space<vmem>>, vector<1x16x256xbf16>,
    %c0_43 = arith.constant 0 : index
    %c64 = arith.constant 64 : index
    %c0_44 = arith.constant 0 : index
    %114 = vector.load %arg4[%c0_43, %c64, %c0_44] : memref<2x144x256xbf16, #tpu.memory_space<vmem>>, vector<1x16x256xbf16>
    %115 = vector.shape_cast %114 : vector<1x16x256xbf16> to vector<16x256xbf16>
    %116 = vector.shape_cast %64 : vector<16x256xbf16> to vector<1x16x256xbf16>
    tpu.vector_store %arg4[%c0_43, %c64, %c0_44], %116 {strides = array<i32>} : memref<2x144x256xbf16, #tpu.memory_space<vmem>>, vector<1x16x256xbf16>,
    %117 = vector.extract_strided_slice %64 {offsets = [0, 1], sizes = [16, 255], strides = [1, 1]} : vector<16x256xbf16> to vector<16x255xbf16>
    %118 = vector.extract_strided_slice %64 {offsets = [0, 0], sizes = [16, 1], strides = [1, 1]} : vector<16x256xbf16> to vector<16x1xbf16>
    %119 = tpu.concatenate %117, %118 in 1 : vector<16x255xbf16>, vector<16x1xbf16> -> vector<16x256xbf16>
    %cst_45 = arith.constant 0.000000e+00 : bf16
    %120 = vector.broadcast %cst_45 : bf16 to vector<16x256xbf16>
    %121 = vector.shape_cast %19 : vector<1x256xi1> to vector<1x256xi1>
    %122 = vector.broadcast %121 : vector<1x256xi1> to vector<16x256xi1>
    %123 = arith.select %122, %119, %120 : vector<16x256xi1>, vector<16x256xbf16>
    %c0_46 = arith.constant 0 : index
    %c80 = arith.constant 80 : index
    %c0_47 = arith.constant 0 : index
    %124 = vector.load %arg4[%c0_46, %c80, %c0_47] : memref<2x144x256xbf16, #tpu.memory_space<vmem>>, vector<1x16x256xbf16>
    %125 = vector.shape_cast %124 : vector<1x16x256xbf16> to vector<16x256xbf16>
    %126 = vector.shape_cast %123 : vector<16x256xbf16> to vector<1x16x256xbf16>
    tpu.vector_store %arg4[%c0_46, %c80, %c0_47], %126 {strides = array<i32>} : memref<2x144x256xbf16, #tpu.memory_space<vmem>>, vector<1x16x256xbf16>,
    %127 = vector.extract_strided_slice %64 {offsets = [0, 15], sizes = [16, 241], strides = [1, 1]} : vector<16x256xbf16> to vector<16x241xbf16>
    %128 = vector.extract_strided_slice %64 {offsets = [0, 0], sizes = [16, 15], strides = [1, 1]} : vector<16x256xbf16> to vector<16x15xbf16>
    %129 = tpu.concatenate %127, %128 in 1 : vector<16x241xbf16>, vector<16x15xbf16> -> vector<16x256xbf16>
    %130 = arith.andi %15, %17 : vector<1x256xi1>
    %cst_48 = arith.constant 0.000000e+00 : bf16
    %131 = vector.broadcast %cst_48 : bf16 to vector<16x256xbf16>
    %132 = vector.shape_cast %130 : vector<1x256xi1> to vector<1x256xi1>
    %133 = vector.broadcast %132 : vector<1x256xi1> to vector<16x256xi1>
    %134 = arith.select %133, %129, %131 : vector<16x256xi1>, vector<16x256xbf16>
    %c0_49 = arith.constant 0 : index
    %c96 = arith.constant 96 : index
    %c0_50 = arith.constant 0 : index
    %135 = vector.load %arg4[%c0_49, %c96, %c0_50] : memref<2x144x256xbf16, #tpu.memory_space<vmem>>, vector<1x16x256xbf16>
    %136 = vector.shape_cast %135 : vector<1x16x256xbf16> to vector<16x256xbf16>
    %137 = vector.shape_cast %134 : vector<16x256xbf16> to vector<1x16x256xbf16>
    tpu.vector_store %arg4[%c0_49, %c96, %c0_50], %137 {strides = array<i32>} : memref<2x144x256xbf16, #tpu.memory_space<vmem>>, vector<1x16x256xbf16>,
    %138 = vector.extract_strided_slice %64 {offsets = [0, 16], sizes = [16, 240], strides = [1, 1]} : vector<16x256xbf16> to vector<16x240xbf16>
    %139 = vector.extract_strided_slice %64 {offsets = [0, 0], sizes = [16, 16], strides = [1, 1]} : vector<16x256xbf16> to vector<16x16xbf16>
    %140 = tpu.concatenate %138, %139 in 1 : vector<16x240xbf16>, vector<16x16xbf16> -> vector<16x256xbf16>
    %cst_51 = arith.constant 0.000000e+00 : bf16
    %141 = vector.broadcast %cst_51 : bf16 to vector<16x256xbf16>
    %142 = vector.shape_cast %15 : vector<1x256xi1> to vector<1x256xi1>
    %143 = vector.broadcast %142 : vector<1x256xi1> to vector<16x256xi1>
    %144 = arith.select %143, %140, %141 : vector<16x256xi1>, vector<16x256xbf16>
    %c0_52 = arith.constant 0 : index
    %c112 = arith.constant 112 : index
    %c0_53 = arith.constant 0 : index
    %145 = vector.load %arg4[%c0_52, %c112, %c0_53] : memref<2x144x256xbf16, #tpu.memory_space<vmem>>, vector<1x16x256xbf16>
    %146 = vector.shape_cast %145 : vector<1x16x256xbf16> to vector<16x256xbf16>
    %147 = vector.shape_cast %144 : vector<16x256xbf16> to vector<1x16x256xbf16>
    tpu.vector_store %arg4[%c0_52, %c112, %c0_53], %147 {strides = array<i32>} : memref<2x144x256xbf16, #tpu.memory_space<vmem>>, vector<1x16x256xbf16>,
    %148 = vector.extract_strided_slice %64 {offsets = [0, 17], sizes = [16, 239], strides = [1, 1]} : vector<16x256xbf16> to vector<16x239xbf16>
    %149 = vector.extract_strided_slice %64 {offsets = [0, 0], sizes = [16, 17], strides = [1, 1]} : vector<16x256xbf16> to vector<16x17xbf16>
    %150 = tpu.concatenate %148, %149 in 1 : vector<16x239xbf16>, vector<16x17xbf16> -> vector<16x256xbf16>
    %151 = arith.andi %15, %19 : vector<1x256xi1>
    %cst_54 = arith.constant 0.000000e+00 : bf16
    %152 = vector.broadcast %cst_54 : bf16 to vector<16x256xbf16>
    %153 = vector.shape_cast %151 : vector<1x256xi1> to vector<1x256xi1>
    %154 = vector.broadcast %153 : vector<1x256xi1> to vector<16x256xi1>
    %155 = arith.select %154, %150, %152 : vector<16x256xi1>, vector<16x256xbf16>
    %c0_55 = arith.constant 0 : index
    %c128 = arith.constant 128 : index
    %c0_56 = arith.constant 0 : index
    %156 = vector.load %arg4[%c0_55, %c128, %c0_56] : memref<2x144x256xbf16, #tpu.memory_space<vmem>>, vector<1x16x256xbf16>
    %157 = vector.shape_cast %156 : vector<1x16x256xbf16> to vector<16x256xbf16>
    %158 = vector.shape_cast %155 : vector<16x256xbf16> to vector<1x16x256xbf16>
    tpu.vector_store %arg4[%c0_55, %c128, %c0_56], %158 {strides = array<i32>} : memref<2x144x256xbf16, #tpu.memory_space<vmem>>, vector<1x16x256xbf16>,
    %159 = vector.extract_strided_slice %71 {offsets = [0, 239], sizes = [16, 17], strides = [1, 1]} : vector<16x256xbf16> to vector<16x17xbf16>
    %160 = vector.extract_strided_slice %71 {offsets = [0, 0], sizes = [16, 239], strides = [1, 1]} : vector<16x256xbf16> to vector<16x239xbf16>
    %161 = tpu.concatenate %159, %160 in 1 : vector<16x17xbf16>, vector<16x239xbf16> -> vector<16x256xbf16>
    %162 = arith.andi %13, %17 : vector<1x256xi1>
    %cst_57 = arith.constant 0.000000e+00 : bf16
    %163 = vector.broadcast %cst_57 : bf16 to vector<16x256xbf16>
    %164 = vector.shape_cast %162 : vector<1x256xi1> to vector<1x256xi1>
    %165 = vector.broadcast %164 : vector<1x256xi1> to vector<16x256xi1>
    %166 = arith.select %165, %161, %163 : vector<16x256xi1>, vector<16x256xbf16>
    %c1_58 = arith.constant 1 : index
    %c0_59 = arith.constant 0 : index
    %c0_60 = arith.constant 0 : index
    %167 = vector.load %arg4[%c1_58, %c0_59, %c0_60] : memref<2x144x256xbf16, #tpu.memory_space<vmem>>, vector<1x16x256xbf16>
    %168 = vector.shape_cast %167 : vector<1x16x256xbf16> to vector<16x256xbf16>
    %169 = vector.shape_cast %166 : vector<16x256xbf16> to vector<1x16x256xbf16>
    tpu.vector_store %arg4[%c1_58, %c0_59, %c0_60], %169 {strides = array<i32>} : memref<2x144x256xbf16, #tpu.memory_space<vmem>>, vector<1x16x256xbf16>,
    %170 = vector.extract_strided_slice %71 {offsets = [0, 240], sizes = [16, 16], strides = [1, 1]} : vector<16x256xbf16> to vector<16x16xbf16>
    %171 = vector.extract_strided_slice %71 {offsets = [0, 0], sizes = [16, 240], strides = [1, 1]} : vector<16x256xbf16> to vector<16x240xbf16>
    %172 = tpu.concatenate %170, %171 in 1 : vector<16x16xbf16>, vector<16x240xbf16> -> vector<16x256xbf16>
    %cst_61 = arith.constant 0.000000e+00 : bf16
    %173 = vector.broadcast %cst_61 : bf16 to vector<16x256xbf16>
    %174 = vector.shape_cast %13 : vector<1x256xi1> to vector<1x256xi1>
    %175 = vector.broadcast %174 : vector<1x256xi1> to vector<16x256xi1>
    %176 = arith.select %175, %172, %173 : vector<16x256xi1>, vector<16x256xbf16>
    %c1_62 = arith.constant 1 : index
    %c16_63 = arith.constant 16 : index
    %c0_64 = arith.constant 0 : index
    %177 = vector.load %arg4[%c1_62, %c16_63, %c0_64] : memref<2x144x256xbf16, #tpu.memory_space<vmem>>, vector<1x16x256xbf16>
    %178 = vector.shape_cast %177 : vector<1x16x256xbf16> to vector<16x256xbf16>
    %179 = vector.shape_cast %176 : vector<16x256xbf16> to vector<1x16x256xbf16>
    tpu.vector_store %arg4[%c1_62, %c16_63, %c0_64], %179 {strides = array<i32>} : memref<2x144x256xbf16, #tpu.memory_space<vmem>>, vector<1x16x256xbf16>,
    %180 = vector.extract_strided_slice %71 {offsets = [0, 241], sizes = [16, 15], strides = [1, 1]} : vector<16x256xbf16> to vector<16x15xbf16>
    %181 = vector.extract_strided_slice %71 {offsets = [0, 0], sizes = [16, 241], strides = [1, 1]} : vector<16x256xbf16> to vector<16x241xbf16>
    %182 = tpu.concatenate %180, %181 in 1 : vector<16x15xbf16>, vector<16x241xbf16> -> vector<16x256xbf16>
    %183 = arith.andi %13, %19 : vector<1x256xi1>
    %cst_65 = arith.constant 0.000000e+00 : bf16
    %184 = vector.broadcast %cst_65 : bf16 to vector<16x256xbf16>
    %185 = vector.shape_cast %183 : vector<1x256xi1> to vector<1x256xi1>
    %186 = vector.broadcast %185 : vector<1x256xi1> to vector<16x256xi1>
    %187 = arith.select %186, %182, %184 : vector<16x256xi1>, vector<16x256xbf16>
    %c1_66 = arith.constant 1 : index
    %c32_67 = arith.constant 32 : index
    %c0_68 = arith.constant 0 : index
    %188 = vector.load %arg4[%c1_66, %c32_67, %c0_68] : memref<2x144x256xbf16, #tpu.memory_space<vmem>>, vector<1x16x256xbf16>
    %189 = vector.shape_cast %188 : vector<1x16x256xbf16> to vector<16x256xbf16>
    %190 = vector.shape_cast %187 : vector<16x256xbf16> to vector<1x16x256xbf16>
    tpu.vector_store %arg4[%c1_66, %c32_67, %c0_68], %190 {strides = array<i32>} : memref<2x144x256xbf16, #tpu.memory_space<vmem>>, vector<1x16x256xbf16>,
    %191 = vector.extract_strided_slice %71 {offsets = [0, 255], sizes = [16, 1], strides = [1, 1]} : vector<16x256xbf16> to vector<16x1xbf16>
    %192 = vector.extract_strided_slice %71 {offsets = [0, 0], sizes = [16, 255], strides = [1, 1]} : vector<16x256xbf16> to vector<16x255xbf16>
    %193 = tpu.concatenate %191, %192 in 1 : vector<16x1xbf16>, vector<16x255xbf16> -> vector<16x256xbf16>
    %cst_69 = arith.constant 0.000000e+00 : bf16
    %194 = vector.broadcast %cst_69 : bf16 to vector<16x256xbf16>
    %195 = vector.shape_cast %17 : vector<1x256xi1> to vector<1x256xi1>
    %196 = vector.broadcast %195 : vector<1x256xi1> to vector<16x256xi1>
    %197 = arith.select %196, %193, %194 : vector<16x256xi1>, vector<16x256xbf16>
    %c1_70 = arith.constant 1 : index
    %c48_71 = arith.constant 48 : index
    %c0_72 = arith.constant 0 : index
    %198 = vector.load %arg4[%c1_70, %c48_71, %c0_72] : memref<2x144x256xbf16, #tpu.memory_space<vmem>>, vector<1x16x256xbf16>
    %199 = vector.shape_cast %198 : vector<1x16x256xbf16> to vector<16x256xbf16>
    %200 = vector.shape_cast %197 : vector<16x256xbf16> to vector<1x16x256xbf16>
    tpu.vector_store %arg4[%c1_70, %c48_71, %c0_72], %200 {strides = array<i32>} : memref<2x144x256xbf16, #tpu.memory_space<vmem>>, vector<1x16x256xbf16>,
    %c1_73 = arith.constant 1 : index
    %c64_74 = arith.constant 64 : index
    %c0_75 = arith.constant 0 : index
    %201 = vector.load %arg4[%c1_73, %c64_74, %c0_75] : memref<2x144x256xbf16, #tpu.memory_space<vmem>>, vector<1x16x256xbf16>
    %202 = vector.shape_cast %201 : vector<1x16x256xbf16> to vector<16x256xbf16>
    %203 = vector.shape_cast %71 : vector<16x256xbf16> to vector<1x16x256xbf16>
    tpu.vector_store %arg4[%c1_73, %c64_74, %c0_75], %203 {strides = array<i32>} : memref<2x144x256xbf16, #tpu.memory_space<vmem>>, vector<1x16x256xbf16>,
    %204 = vector.extract_strided_slice %71 {offsets = [0, 1], sizes = [16, 255], strides = [1, 1]} : vector<16x256xbf16> to vector<16x255xbf16>
    %205 = vector.extract_strided_slice %71 {offsets = [0, 0], sizes = [16, 1], strides = [1, 1]} : vector<16x256xbf16> to vector<16x1xbf16>
    %206 = tpu.concatenate %204, %205 in 1 : vector<16x255xbf16>, vector<16x1xbf16> -> vector<16x256xbf16>
    %cst_76 = arith.constant 0.000000e+00 : bf16
    %207 = vector.broadcast %cst_76 : bf16 to vector<16x256xbf16>
    %208 = vector.shape_cast %19 : vector<1x256xi1> to vector<1x256xi1>
    %209 = vector.broadcast %208 : vector<1x256xi1> to vector<16x256xi1>
    %210 = arith.select %209, %206, %207 : vector<16x256xi1>, vector<16x256xbf16>
    %c1_77 = arith.constant 1 : index
    %c80_78 = arith.constant 80 : index
    %c0_79 = arith.constant 0 : index
    %211 = vector.load %arg4[%c1_77, %c80_78, %c0_79] : memref<2x144x256xbf16, #tpu.memory_space<vmem>>, vector<1x16x256xbf16>
    %212 = vector.shape_cast %211 : vector<1x16x256xbf16> to vector<16x256xbf16>
    %213 = vector.shape_cast %210 : vector<16x256xbf16> to vector<1x16x256xbf16>
    tpu.vector_store %arg4[%c1_77, %c80_78, %c0_79], %213 {strides = array<i32>} : memref<2x144x256xbf16, #tpu.memory_space<vmem>>, vector<1x16x256xbf16>,
    %214 = vector.extract_strided_slice %71 {offsets = [0, 15], sizes = [16, 241], strides = [1, 1]} : vector<16x256xbf16> to vector<16x241xbf16>
    %215 = vector.extract_strided_slice %71 {offsets = [0, 0], sizes = [16, 15], strides = [1, 1]} : vector<16x256xbf16> to vector<16x15xbf16>
    %216 = tpu.concatenate %214, %215 in 1 : vector<16x241xbf16>, vector<16x15xbf16> -> vector<16x256xbf16>
    %217 = arith.andi %15, %17 : vector<1x256xi1>
    %cst_80 = arith.constant 0.000000e+00 : bf16
    %218 = vector.broadcast %cst_80 : bf16 to vector<16x256xbf16>
    %219 = vector.shape_cast %217 : vector<1x256xi1> to vector<1x256xi1>
    %220 = vector.broadcast %219 : vector<1x256xi1> to vector<16x256xi1>
    %221 = arith.select %220, %216, %218 : vector<16x256xi1>, vector<16x256xbf16>
    %c1_81 = arith.constant 1 : index
    %c96_82 = arith.constant 96 : index
    %c0_83 = arith.constant 0 : index
    %222 = vector.load %arg4[%c1_81, %c96_82, %c0_83] : memref<2x144x256xbf16, #tpu.memory_space<vmem>>, vector<1x16x256xbf16>
    %223 = vector.shape_cast %222 : vector<1x16x256xbf16> to vector<16x256xbf16>
    %224 = vector.shape_cast %221 : vector<16x256xbf16> to vector<1x16x256xbf16>
    tpu.vector_store %arg4[%c1_81, %c96_82, %c0_83], %224 {strides = array<i32>} : memref<2x144x256xbf16, #tpu.memory_space<vmem>>, vector<1x16x256xbf16>,
    %225 = vector.extract_strided_slice %71 {offsets = [0, 16], sizes = [16, 240], strides = [1, 1]} : vector<16x256xbf16> to vector<16x240xbf16>
    %226 = vector.extract_strided_slice %71 {offsets = [0, 0], sizes = [16, 16], strides = [1, 1]} : vector<16x256xbf16> to vector<16x16xbf16>
    %227 = tpu.concatenate %225, %226 in 1 : vector<16x240xbf16>, vector<16x16xbf16> -> vector<16x256xbf16>
    %cst_84 = arith.constant 0.000000e+00 : bf16
    %228 = vector.broadcast %cst_84 : bf16 to vector<16x256xbf16>
    %229 = vector.shape_cast %15 : vector<1x256xi1> to vector<1x256xi1>
    %230 = vector.broadcast %229 : vector<1x256xi1> to vector<16x256xi1>
    %231 = arith.select %230, %227, %228 : vector<16x256xi1>, vector<16x256xbf16>
    %c1_85 = arith.constant 1 : index
    %c112_86 = arith.constant 112 : index
    %c0_87 = arith.constant 0 : index
    %232 = vector.load %arg4[%c1_85, %c112_86, %c0_87] : memref<2x144x256xbf16, #tpu.memory_space<vmem>>, vector<1x16x256xbf16>
    %233 = vector.shape_cast %232 : vector<1x16x256xbf16> to vector<16x256xbf16>
    %234 = vector.shape_cast %231 : vector<16x256xbf16> to vector<1x16x256xbf16>
    tpu.vector_store %arg4[%c1_85, %c112_86, %c0_87], %234 {strides = array<i32>} : memref<2x144x256xbf16, #tpu.memory_space<vmem>>, vector<1x16x256xbf16>,
    %235 = vector.extract_strided_slice %71 {offsets = [0, 17], sizes = [16, 239], strides = [1, 1]} : vector<16x256xbf16> to vector<16x239xbf16>
    %236 = vector.extract_strided_slice %71 {offsets = [0, 0], sizes = [16, 17], strides = [1, 1]} : vector<16x256xbf16> to vector<16x17xbf16>
    %237 = tpu.concatenate %235, %236 in 1 : vector<16x239xbf16>, vector<16x17xbf16> -> vector<16x256xbf16>
    %238 = arith.andi %15, %19 : vector<1x256xi1>
    %cst_88 = arith.constant 0.000000e+00 : bf16
    %239 = vector.broadcast %cst_88 : bf16 to vector<16x256xbf16>
    %240 = vector.shape_cast %238 : vector<1x256xi1> to vector<1x256xi1>
    %241 = vector.broadcast %240 : vector<1x256xi1> to vector<16x256xi1>
    %242 = arith.select %241, %237, %239 : vector<16x256xi1>, vector<16x256xbf16>
    %c1_89 = arith.constant 1 : index
    %c128_90 = arith.constant 128 : index
    %c0_91 = arith.constant 0 : index
    %243 = vector.load %arg4[%c1_89, %c128_90, %c0_91] : memref<2x144x256xbf16, #tpu.memory_space<vmem>>, vector<1x16x256xbf16>
    %244 = vector.shape_cast %243 : vector<1x16x256xbf16> to vector<16x256xbf16>
    %245 = vector.shape_cast %242 : vector<16x256xbf16> to vector<1x16x256xbf16>
    tpu.vector_store %arg4[%c1_89, %c128_90, %c0_91], %245 {strides = array<i32>} : memref<2x144x256xbf16, #tpu.memory_space<vmem>>, vector<1x16x256xbf16>,
    %c0_92 = arith.constant 0 : index
    %c0_93 = arith.constant 0 : index
    %c0_94 = arith.constant 0 : index
    %246 = vector.load %arg4[%c0_92, %c0_93, %c0_94] : memref<2x144x256xbf16, #tpu.memory_space<vmem>>, vector<1x144x256xbf16>
    %247 = vector.shape_cast %246 : vector<1x144x256xbf16> to vector<144x256xbf16>
    %cst_95 = arith.constant dense<0.000000e+00> : vector<16x256xf32>
    %248 = tpu.matmul %1, %247, %cst_95 {dimension_numbers = #tpu.dot_dimension_numbers<[1], [0], [0], [1], [0, 0, 1, 1], [], []>} : vector<16x144xbf16>, vector<144x256xbf16>, vector<16x256xf32> -> vector<16x256xf32>
    %c1_96 = arith.constant 1 : index
    %c0_97 = arith.constant 0 : index
    %c0_98 = arith.constant 0 : index
    %249 = vector.load %arg4[%c1_96, %c0_97, %c0_98] : memref<2x144x256xbf16, #tpu.memory_space<vmem>>, vector<1x144x256xbf16>
    %250 = vector.shape_cast %249 : vector<1x144x256xbf16> to vector<144x256xbf16>
    %cst_99 = arith.constant dense<0.000000e+00> : vector<16x256xf32>
    %251 = tpu.matmul %1, %250, %cst_99 {dimension_numbers = #tpu.dot_dimension_numbers<[1], [0], [0], [1], [0, 0, 1, 1], [], []>} : vector<16x144xbf16>, vector<144x256xbf16>, vector<16x256xf32> -> vector<16x256xf32>
    %cst_100 = arith.constant dense<0.000000e+00> : vector<16xf32>
    %252 = vector.multi_reduction <add>, %248, %cst_100 [1] : vector<16x256xf32> to vector<16xf32>
    %253 = vector.shape_cast %252 : vector<16xf32> to vector<16x1xf32>
    %cst_101 = arith.constant 0.000000e+00 : f32
    %254 = vector.broadcast %cst_101 : f32 to vector<16x1xf32>
    %255 = arith.addf %254, %253 : vector<16x1xf32>
    %cst_102 = arith.constant dense<0.000000e+00> : vector<16xf32>
    %256 = vector.multi_reduction <add>, %251, %cst_102 [1] : vector<16x256xf32> to vector<16xf32>
    %257 = vector.shape_cast %256 : vector<16xf32> to vector<16x1xf32>
    %258 = arith.addf %255, %257 : vector<16x1xf32>
    %259 = arith.mulf %248, %248 : vector<16x256xf32>
    %cst_103 = arith.constant dense<0.000000e+00> : vector<16xf32>
    %260 = vector.multi_reduction <add>, %259, %cst_103 [1] : vector<16x256xf32> to vector<16xf32>
    %261 = vector.shape_cast %260 : vector<16xf32> to vector<16x1xf32>
    %cst_104 = arith.constant 0.000000e+00 : f32
    %262 = vector.broadcast %cst_104 : f32 to vector<16x1xf32>
    %263 = arith.addf %262, %261 : vector<16x1xf32>
    %264 = arith.mulf %251, %251 : vector<16x256xf32>
    %cst_105 = arith.constant dense<0.000000e+00> : vector<16xf32>
    %265 = vector.multi_reduction <add>, %264, %cst_105 [1] : vector<16x256xf32> to vector<16xf32>
    %266 = vector.shape_cast %265 : vector<16xf32> to vector<16x1xf32>
    %267 = arith.addf %263, %266 : vector<16x1xf32>
    %cst_106 = arith.constant 0.001953125 : f32
    %268 = vector.broadcast %cst_106 : f32 to vector<16x1xf32>
    %269 = arith.mulf %258, %268 : vector<16x1xf32>
    %cst_107 = arith.constant 0.001953125 : f32
    %270 = vector.broadcast %cst_107 : f32 to vector<16x1xf32>
    %271 = arith.mulf %267, %270 : vector<16x1xf32>
    %272 = arith.mulf %269, %269 : vector<16x1xf32>
    %273 = arith.subf %271, %272 : vector<16x1xf32>
    %cst_108 = arith.constant 0.000000e+00 : f32
    %274 = vector.broadcast %cst_108 : f32 to vector<16x1xf32>
    %275 = arith.maximumf %273, %274 : vector<16x1xf32>
    %cst_109 = arith.constant 9.99999974E-6 : f32
    %276 = vector.broadcast %cst_109 : f32 to vector<16x1xf32>
    %277 = arith.addf %275, %276 : vector<16x1xf32>
    %278 = math.rsqrt %277 : vector<16x1xf32>
    %279 = arith.mulf %5, %278 : vector<16x1xf32>
    %280 = arith.mulf %269, %279 : vector<16x1xf32>
    %281 = arith.subf %6, %280 : vector<16x1xf32>
    %282 = vector.broadcast %279 : vector<16x1xf32> to vector<16x256xf32>
    %283 = arith.mulf %248, %282 : vector<16x256xf32>
    %284 = vector.broadcast %281 : vector<16x1xf32> to vector<16x256xf32>
    %285 = arith.addf %283, %284 : vector<16x256xf32>
    %cst_110 = arith.constant 0.000000e+00 : f32
    %286 = vector.broadcast %cst_110 : f32 to vector<16x256xf32>
    %287 = arith.maximumf %285, %286 : vector<16x256xf32>
    %288 = arith.truncf %287 : vector<16x256xf32> to vector<16x256xbf16>
    %289 = vector.broadcast %279 : vector<16x1xf32> to vector<16x256xf32>
    %290 = arith.mulf %251, %289 : vector<16x256xf32>
    %291 = vector.broadcast %281 : vector<16x1xf32> to vector<16x256xf32>
    %292 = arith.addf %290, %291 : vector<16x256xf32>
    %cst_111 = arith.constant 0.000000e+00 : f32
    %293 = vector.broadcast %cst_111 : f32 to vector<16x256xf32>
    %294 = arith.maximumf %292, %293 : vector<16x256xf32>
    %295 = arith.truncf %294 : vector<16x256xf32> to vector<16x256xbf16>
    %cst_112 = arith.constant dense<0.000000e+00> : vector<16x256xf32>
    %296 = tpu.matmul %2, %288, %cst_112 {dimension_numbers = #tpu.dot_dimension_numbers<[1], [0], [0], [1], [0, 0, 1, 1], [], []>} : vector<16x16xbf16>, vector<16x256xbf16>, vector<16x256xf32> -> vector<16x256xf32>
    %cst_113 = arith.constant dense<0.000000e+00> : vector<16x256xf32>
    %297 = tpu.matmul %2, %295, %cst_113 {dimension_numbers = #tpu.dot_dimension_numbers<[1], [0], [0], [1], [0, 0, 1, 1], [], []>} : vector<16x16xbf16>, vector<16x256xbf16>, vector<16x256xf32> -> vector<16x256xf32>
    %cst_114 = arith.constant dense<0.000000e+00> : vector<16xf32>
    %298 = vector.multi_reduction <add>, %296, %cst_114 [1] : vector<16x256xf32> to vector<16xf32>
    %299 = vector.shape_cast %298 : vector<16xf32> to vector<16x1xf32>
    %cst_115 = arith.constant 0.000000e+00 : f32
    %300 = vector.broadcast %cst_115 : f32 to vector<16x1xf32>
    %301 = arith.addf %300, %299 : vector<16x1xf32>
    %cst_116 = arith.constant dense<0.000000e+00> : vector<16xf32>
    %302 = vector.multi_reduction <add>, %297, %cst_116 [1] : vector<16x256xf32> to vector<16xf32>
    %303 = vector.shape_cast %302 : vector<16xf32> to vector<16x1xf32>
    %304 = arith.addf %301, %303 : vector<16x1xf32>
    %305 = arith.mulf %296, %296 : vector<16x256xf32>
    %cst_117 = arith.constant dense<0.000000e+00> : vector<16xf32>
    %306 = vector.multi_reduction <add>, %305, %cst_117 [1] : vector<16x256xf32> to vector<16xf32>
    %307 = vector.shape_cast %306 : vector<16xf32> to vector<16x1xf32>
    %cst_118 = arith.constant 0.000000e+00 : f32
    %308 = vector.broadcast %cst_118 : f32 to vector<16x1xf32>
    %309 = arith.addf %308, %307 : vector<16x1xf32>
    %310 = arith.mulf %297, %297 : vector<16x256xf32>
    %cst_119 = arith.constant dense<0.000000e+00> : vector<16xf32>
    %311 = vector.multi_reduction <add>, %310, %cst_119 [1] : vector<16x256xf32> to vector<16xf32>
    %312 = vector.shape_cast %311 : vector<16xf32> to vector<16x1xf32>
    %313 = arith.addf %309, %312 : vector<16x1xf32>
    %cst_120 = arith.constant 0.001953125 : f32
    %314 = vector.broadcast %cst_120 : f32 to vector<16x1xf32>
    %315 = arith.mulf %304, %314 : vector<16x1xf32>
    %cst_121 = arith.constant 0.001953125 : f32
    %316 = vector.broadcast %cst_121 : f32 to vector<16x1xf32>
    %317 = arith.mulf %313, %316 : vector<16x1xf32>
    %318 = arith.mulf %315, %315 : vector<16x1xf32>
    %319 = arith.subf %317, %318 : vector<16x1xf32>
    %cst_122 = arith.constant 0.000000e+00 : f32
    %320 = vector.broadcast %cst_122 : f32 to vector<16x1xf32>
    %321 = arith.maximumf %319, %320 : vector<16x1xf32>
    %cst_123 = arith.constant 9.99999974E-6 : f32
    %322 = vector.broadcast %cst_123 : f32 to vector<16x1xf32>
    %323 = arith.addf %321, %322 : vector<16x1xf32>
    %324 = math.rsqrt %323 : vector<16x1xf32>
    %325 = arith.mulf %7, %324 : vector<16x1xf32>
    %326 = arith.mulf %315, %325 : vector<16x1xf32>
    %327 = arith.subf %8, %326 : vector<16x1xf32>
    %328 = vector.broadcast %325 : vector<16x1xf32> to vector<16x256xf32>
    %329 = arith.mulf %296, %328 : vector<16x256xf32>
    %330 = vector.broadcast %327 : vector<16x1xf32> to vector<16x256xf32>
    %331 = arith.addf %329, %330 : vector<16x256xf32>
    %332 = arith.addf %331, %21 : vector<16x256xf32>
    %cst_124 = arith.constant 0.000000e+00 : f32
    %333 = vector.broadcast %cst_124 : f32 to vector<16x256xf32>
    %334 = arith.maximumf %332, %333 : vector<16x256xf32>
    %c0_125 = arith.constant 0 : index
    %c0_126 = arith.constant 0 : index
    %c0_127 = arith.constant 0 : index
    %335 = vector.load %arg3[%c0_125, %c0_126, %c0_127] : memref<2x16x256xf32, #tpu.memory_space<vmem>>, vector<1x16x256xf32>
    %336 = vector.shape_cast %335 : vector<1x16x256xf32> to vector<16x256xf32>
    %337 = vector.shape_cast %334 : vector<16x256xf32> to vector<1x16x256xf32>
    tpu.vector_store %arg3[%c0_125, %c0_126, %c0_127], %337 {strides = array<i32>} : memref<2x16x256xf32, #tpu.memory_space<vmem>>, vector<1x16x256xf32>,
    %338 = vector.broadcast %325 : vector<16x1xf32> to vector<16x256xf32>
    %339 = arith.mulf %297, %338 : vector<16x256xf32>
    %340 = vector.broadcast %327 : vector<16x1xf32> to vector<16x256xf32>
    %341 = arith.addf %339, %340 : vector<16x256xf32>
    %342 = arith.addf %341, %23 : vector<16x256xf32>
    %cst_128 = arith.constant 0.000000e+00 : f32
    %343 = vector.broadcast %cst_128 : f32 to vector<16x256xf32>
    %344 = arith.maximumf %342, %343 : vector<16x256xf32>
    %c1_129 = arith.constant 1 : index
    %c0_130 = arith.constant 0 : index
    %c0_131 = arith.constant 0 : index
    %345 = vector.load %arg3[%c1_129, %c0_130, %c0_131] : memref<2x16x256xf32, #tpu.memory_space<vmem>>, vector<1x16x256xf32>
    %346 = vector.shape_cast %345 : vector<1x16x256xf32> to vector<16x256xf32>
    %347 = vector.shape_cast %344 : vector<16x256xf32> to vector<1x16x256xf32>
    tpu.vector_store %arg3[%c1_129, %c0_130, %c0_131], %347 {strides = array<i32>} : memref<2x16x256xf32, #tpu.memory_space<vmem>>, vector<1x16x256xf32>,
    return
  }
}

</mosaic_0001>

<bundles_post_ra>
// kernel: fwd.1
= control target key start
LH: loop header
LB: loop body
LE: loop exit
PB: predicated region body
PF: predicated region fallthrough
CT: control target
= control target key end

     0   :  { %v1650_v3 = vmov 0   ;;  %vm54_vm0 = vcmask 130048   ;;  %v1651_v62 = vmov 1   ;;  %s1652_s7 = smov 1   ;;  %s1654_s8 = smov 113   ;;  %vm1660_vm2 = vmmov 1   ;;  %s2257_s0 = inlined_call_operand.vmem [shape: f32[2,16,256], index: 0, kind: input, shape index: {}]   ;;  %s2258_s1 = inlined_call_operand.vmem [shape: bf16[16,176], index: 1, kind: input, shape index: {}]   ;;  %s2259_s2 = inlined_call_operand.vmem [shape: f32[16,6], index: 2, kind: input, shape index: {}]   ;;  %s2260_s3 = inlined_call_operand.vmem [shape: f32[2,16,256], index: 3, kind: output, shape index: {}]  }
   0x1   :  { %v39_v0 = vld [vmem:[%s2257_s0 + $0x8] sm:$0xff]  ;;  %v41_v1 = vld [vmem:[%s2257_s0 + $0x18] sm:$0xff]  ;;  %90 = vmatprep.mubr.bf16.mxu0 %v1650_v3  ;;  %135 = vmatprep.mubr.bf16.mxu1 %v1650_v3  ;;  %v38_v6 = vld [vmem:[%s2257_s0] sm:$0xff]  ;;  %s1655_s9 = smov 127   ;;  %s1656_s10 = smov 15   ;;  %vm535_vm8 = vcmask 916480  }
   0x2   :  { %v1487_v2 = vld [vmem:[%s2257_s0 + $0x28] sm:$0xff]  ;;  %v48_v4 = vpack.c.bf16 %v41_v1, %v39_v0  ;;  %v1489_v5 = vld [vmem:[%s2257_s0 + $0x38] sm:$0xff]  ;;  %v40_v7 = vld [vmem:[%s2257_s0 + $0x10] sm:$0xff]  ;;  %1616 = vset.pattern.permute.xlu1 %v1650_v3  ;;  %1617 = vset.pattern.permute.xlu0 %v1651_v62  ;;  %s1657_s11 = smov 16   ;;  %s1658_s12 = smov 17   ;;  %vm491_vm14 = vcmask 924672  }
   0x3   :  { %v102_v8 = vpack.c.bf16 %v1489_v5, %v1487_v2  ;;  %v47_v9 = vpack.c.bf16 %v40_v7, %v38_v6  ;;  %v1486_v10 = vld [vmem:[%s2257_s0 + $0x20] sm:$0xff]  ;;  %v1488_v11 = vld [vmem:[%s2257_s0 + $0x30] sm:$0xff]  ;;  %v1766_v0 = vld [vmem:[%s2259_s2 + $0x8] sm:$0xff]  ;;  %s1659_s13 = smov 111   ;;  %s1663_s20 = smov 96  }
   0x4   :  { %72 = vmatprep.subr.bf16.mxu0 %v48_v4  ;;  %v101_v12 = vpack.c.bf16 %v1488_v11, %v1486_v10  ;;  %v1625_v13 = vld [vmem:[%s2258_s1] ss:$8 sps:$4 sm:$0xff]  }
   0x5   :  { %117 = vmatprep.subr.bf16.mxu1 %v102_v8  ;;  %73 = vmatpush1.bf16.msra.mxu0 %v47_v9  ;;  %v1761_v63 = vld [vmem:[%s2259_s2] sm:$0xff]  ;;  %s1653_s2 = smov 112  }
   0x6   :  { %118 = vmatpush1.bf16.msra.mxu1 %v101_v12 }
   0x8   :  { %1491 = vmatmul.mubr.msk.bf16.vlgmr.msra.gmra.mxu0 %vm54_vm0, %v1625_v13 }
   0x9   :  { %1492 = vmatmul.mubr.msk.bf16.vlgmr.msra.gmra.mxu1 %vm54_vm0, %v1625_v13 }
  0xc8   :  { %v1718_v14 = vpop.f32.mrf.mxu0 }
  0xc9   :  { %v1720_v15 = vpop.f32.mrf.mxu1  ;;  %v162_v23 = vmul.f32 %v1718_v14, %v1718_v14 }
  0xca   :  { %v1722_v16 = vpop.f32.mrf.mxu0  ;;  %v174_v34 = vmul.f32 %v1720_v15, %v1720_v15 }
  0xcb   :  { %v1724_v17 = vpop.f32.mrf.mxu1  ;;  %v146_v18 = vadd.f32 %v1722_v16, %v1718_v14  ;;  %v163_v19 = vmul.f32 %v1722_v16, %v1722_v16 }
  0xcc   :  { %v1730_v20 = vpop.f32.mrf.mxu0  ;;  %v154_v21 = vadd.f32 %v1724_v17, %v1720_v15  ;;  %v175_v31 = vmul.f32 %v1724_v17, %v1724_v17 }
  0xcd   :  { %v1734_v22 = vpop.f32.mrf.mxu1  ;;  %147 = vadd.xlane.f32.xlu0 %v146_v18  ;;  %v166_v26 = vadd.f32 %v163_v19, %v162_v23  ;;  %v164_v29 = vmul.f32 %v1730_v20, %v1730_v20 }
  0xce   :  { %155 = vadd.xlane.f32.xlu1 %v154_v21  ;;  %v1738_v24 = vpop.f32.mrf.mxu0  ;;  %v176_v35 = vmul.f32 %v1734_v22, %v1734_v22  ;;  %v178_v36 = vadd.f32 %v175_v31, %v174_v34 }
  0xcf   :  { %v1740_v25 = vpop.f32.mrf.mxu1  ;;  %v165_v28 = vmul.f32 %v1738_v24, %v1738_v24  ;;  %v149_v30 = vadd.f32 %v1738_v24, %v1730_v20 }
  0xd0   :  { %v157_v27 = vadd.f32 %v1740_v25, %v1734_v22  ;;  %v177_v33 = vmul.f32 %v1740_v25, %v1740_v25 }
  0xd1   :  { %167 = vadd.xlane.f32.xlu0 %v166_v26  ;;  %v169_v32 = vadd.f32 %v165_v28, %v164_v29 }
  0xd2   :  { %158 = vadd.xlane.f32.xlu1 %v157_v27  ;;  %v181_v37 = vadd.f32 %v177_v33, %v176_v35 }
  0xd5   :  { %150 = vadd.xlane.f32.xlu0 %v149_v30 }
  0xd6   :  { %170 = vadd.xlane.f32.xlu1 %v169_v32 }
  0xd9   :  { %179 = vadd.xlane.f32.xlu0 %v178_v36 }
  0xda   :  { %182 = vadd.xlane.f32.xlu1 %v181_v37 }
 0x156   :  { %v148_v38 = vpop.xlane.xlu0 %147 }
 0x157   :  { %v156_v39 = vpop.xlane.xlu1 %155 }
 0x158   :  { %v160_v42 = vadd.f32 %v156_v39, %v148_v38 }
 0x15a   :  { %v168_v40 = vpop.xlane.xlu0 %167  ;;  %v186_v46 = vmul.f32 0.001953125, %v160_v42 }
 0x15b   :  { %v159_v41 = vpop.xlane.xlu1 %158 }
 0x15c   :  { %v190_v52 = vmul.f32 %v186_v46, %v186_v46 }
 0x15e   :  { %v151_v43 = vpop.xlane.xlu0 %150 }
 0x15f   :  { %v171_v44 = vpop.xlane.xlu1 %170  ;;  %v161_v45 = vadd.f32 %v159_v41, %v151_v43 }
 0x161   :  { %v187_v47 = vmul.f32 0.001953125, %v161_v45  ;;  %v1628_v45 = vld [vmem:[%s2258_s1] ss:$8 sps:$4 sm:$0xff]  }
 0x162   :  { %v180_v48 = vpop.xlane.xlu0 %179 }
 0x163   :  { %v183_v49 = vpop.xlane.xlu1 %182  ;;  %v184_v50 = vadd.f32 %v180_v48, %v168_v40  ;;  %v191_v54 = vmul.f32 %v187_v47, %v187_v47 }
 0x164   :  { %v185_v51 = vadd.f32 %v183_v49, %v171_v44  ;;  %v1626_v44 = vld [vmem:[%s2258_s1 + $0x4] ss:$8 sps:$4 sm:$0xff]  }
 0x165   :  { %v188_v53 = vmul.f32 0.001953125, %v184_v50 }
 0x166   :  { %v189_v55 = vmul.f32 0.001953125, %v185_v51 }
 0x167   :  { %v192_v56 = vsub.f32 %v188_v53, %v190_v52 }
 0x168   :  { %v193_v57 = vsub.f32 %v189_v55, %v191_v54 }
 0x169   :  { %v194_v58 = vmax.f32 %v192_v56, 0.0 }
 0x16a   :  { %v195_v59 = vmax.f32 %v193_v57, 0.0 }
 0x16b   :  { %v196_v60 = vadd.f32 1e-05, %v194_v58 }
 0x16c   :  { %v197_v61 = vadd.f32 1e-05, %v195_v59 }
 0x16d   :  { %1630 = vrsqrt.f32 %v196_v60 }
 0x16e   :  { %1632 = vrsqrt.f32 %v197_v61 }
 0x17a   :  { %v1631_v1 = vpop.eup %1630 }
 0x17b   :  { %v1633_v2 = vpop.eup %1632  ;;  %v200_v4 = vmul.f32 %v1631_v1, %v1761_v63 }
 0x17c   :  { %v201_v5 = vmul.f32 %v1633_v2, %v1766_v0 }
 0x17d   :  { %v202_v6 = vmul.f32 %v200_v4, %v186_v46  ;;  %v25_v46 = vlaneseq }
 0x17e   :  { %v203_v7 = vmul.f32 %v201_v5, %v187_v47 }
 0x17f   :  { %206 = vrot.lane.b32.xlu0 %v202_v6, %s1652_s7  ;;  %v1838_v47 = vand.u32 127, %v25_v46  ;;  %v285_v49 = vshrl.u32 %v25_v46, 7 }
 0x180   :  { %208 = vrot.lane.b32.xlu1 %v203_v7, %s1652_s7 }
 0x181   :  { %v1841_v48 = vadd.s32 128, %v1838_v47  ;;  %v28_v51 = vand.u32 15, %v1838_v47  ;;  %v1849_v52 = vsub.s32 0, %v285_v49  ;;  %v1851_v53 = vsub.s32 4, %v285_v49 }
 0x183   :  { %vm33_vm1 = vcmp.lt.s32.totalorder %v1841_v48, 240  ;;  %v29_v50 = vand.u32 15, %v1841_v48  ;;  %vm1858_vm5 = vcmp.ge.s32.totalorder %v28_v51, 1  ;;  %vm1885_vm11 = vcmp.le.s32.totalorder %v28_v51, 14 }
 0x184   :  { %216 = vperm.xlu1 %1616, %v200_v4   ;;  %vm547_vm3 = vmpackc.low %vm33_vm1, %vm1660_vm2 }
 0x185   :  { %vm1853_vm4 = vcmp.ge.s32.totalorder %v29_v50, 1  ;;  %v548_v55 = vsel %vm547_vm3, 65537, %v1650_v3  ;;  %vm1889_vm12 = vcmp.le.s32.totalorder %v29_v50, 14 }
 0x186   :  { %vm500_vm6 = vmand %vm33_vm1, %vm1853_vm4  ;;  %v552_v57 = vrot.slane %v548_v55, %v1849_v52  ;;  %v556_v58 = vrot.slane %v548_v55, %v1851_v53 }
 0x187   :  { %vm505_vm7 = vmpackc.low %vm500_vm6, %vm1858_vm5 }
 0x188   :  { %221 = vperm.xlu1 %1616, %v201_v5   ;;  %vm1870_vm9 = vcmp.ne.s16.totalorder %v552_v57, 0  ;;  %vm1874_vm10 = vcmp.ne.s16.totalorder %v556_v58, 0  ;;  %v506_v1 = vsel %vm505_vm7, 65537, %v1650_v3  ;;  %vm461_vm13 = vmpackc.low %vm1889_vm12, %vm1885_vm11  ;;  %vm449_vm7 = vcmask 1039360  }
 0x189   :  { %vm409_vm6 = vmpackc.low %vm1853_vm4, %vm1858_vm5 }
 0x18c   :  { %1618 = vset.pattern.permute.xlu1 %v1651_v62 }
 0x1f1   :  { %v207_v8 = vpop.permute.xlu0 %206 }
 0x1f2   :  { %v209_v9 = vpop.permute.xlu1 %208  ;;  %v212_v10 = vsub.f32 %v1761_v63, %v207_v8  ;;  %v510_v8 = vrot.slane %v506_v1, %v1849_v52 }
 0x1f3   :  { %v213_v11 = vsub.f32 %v1766_v0, %v209_v9  ;;  %v514_v9 = vrot.slane %v506_v1, %v1851_v53 }
 0x1f4   :  { %230 = vperm.xlu0 %1617, %v212_v10   ;;  %vm1905_vm15 = vcmp.ne.s16.totalorder %v510_v8, 0 }
 0x1f5   :  { %235 = vperm.xlu1 %1618, %v213_v11   ;;  %vm1909_vm3 = vcmp.ne.s16.totalorder %v514_v9, 0 }
 0x1ff   :  { %v217_v12 = vpop.permute.xlu1 %216 }
 0x200   :  { %v224_v18 = vmul.f32 %v217_v12, %v1718_v14  ;;  %v225_v19 = vmul.f32 %v217_v12, %v1722_v16  ;;  %v248_v21 = vmul.f32 %v217_v12, %v1720_v15  ;;  %v249_v23 = vmul.f32 %v217_v12, %v1724_v17 }
 0x203   :  { %v222_v13 = vpop.permute.xlu1 %221 }
 0x204   :  { %v226_v26 = vmul.f32 %v222_v13, %v1730_v20  ;;  %v227_v27 = vmul.f32 %v222_v13, %v1738_v24  ;;  %v250_v28 = vmul.f32 %v222_v13, %v1734_v22  ;;  %v251_v29 = vmul.f32 %v222_v13, %v1740_v25 }
 0x26f   :  { %v231_v30 = vpop.permute.xlu0 %230 }
 0x270   :  { %v236_v31 = vpop.permute.xlu1 %235  ;;  %v238_v32 = vadd.f32 %v231_v30, %v224_v18  ;;  %v239_v33 = vadd.f32 %v231_v30, %v225_v19  ;;  %v252_v34 = vadd.f32 %v248_v21, %v231_v30  ;;  %v253_v14 = vadd.f32 %v249_v23, %v231_v30 }
 0x271   :  { %v240_v35 = vadd.f32 %v236_v31, %v226_v26  ;;  %v241_v16 = vadd.f32 %v236_v31, %v227_v27  ;;  %v254_v36 = vadd.f32 %v250_v28, %v236_v31  ;;  %v255_v15 = vadd.f32 %v251_v29, %v236_v31 }
 0x272   :  { %v242_v37 = vmax.f32 %v238_v32, 0.0  ;;  %v243_v17 = vmax.f32 %v239_v33, 0.0  ;;  %v256_v39 = vmax.f32 %v252_v34, 0.0  ;;  %v257_v24 = vmax.f32 %v253_v14, 0.0 }
 0x273   :  { %v244_v38 = vmax.f32 %v240_v35, 0.0  ;;  %v245_v20 = vmax.f32 %v241_v16, 0.0  ;;  %v258_v40 = vmax.f32 %v254_v36, 0.0  ;;  %v259_v22 = vmax.f32 %v255_v15, 0.0 }
 0x274   :  { %v462_v27 = vsel %vm461_vm13, 65537, %v1650_v3  ;;  %vm30_vm13 = vcmp.ge.s32.totalorder %v1838_v47, 16 }
 0x275   :  { %v1782_v41 = vpack.c.bf16 %v244_v38, %v242_v37  ;;  %v1784_v25 = vpack.c.bf16 %v245_v20, %v243_v17  ;;  %v1790_v42 = vpack.c.bf16 %v258_v40, %v256_v39  ;;  %v1792_v43 = vpack.c.bf16 %v259_v22, %v257_v24 }
 0x276   :  { %v466_v31 = vrot.slane %v462_v27, %v1849_v52  ;;  %v470_v32 = vrot.slane %v462_v27, %v1851_v53  ;;  %v410_v38 = vsel %vm409_vm6, 65537, %v1650_v3 }
 0x277   :  { %533 = vrot.lane.b32.xlu0 %v1784_v25, %s1653_s2  ;;  %531 = vrot.lane.b32.xlu1 %v1782_v41, %s1653_s2  ;;  %v414_v22 = vrot.slane %v410_v38, %v1849_v52 }
 0x279   :  { %vm1970_vm6 = vcmp.ne.s16.totalorder %v414_v22, 0 }
 0x27b   :  { %776 = vrot.lane.b32.xlu0 %v1792_v43, %s1653_s2  ;;  %774 = vrot.lane.b32.xlu1 %v1790_v42, %s1653_s2 }
 0x27f   :  { %489 = vrot.lane.b32.xlu0 %v1784_v25, %s1654_s8  ;;  %487 = vrot.lane.b32.xlu1 %v1782_v41, %s1654_s8 }
 0x283   :  { %752 = vrot.lane.b32.xlu0 %v1792_v43, %s1654_s8  ;;  %750 = vrot.lane.b32.xlu1 %v1790_v42, %s1654_s8 }
 0x287   :  { %447 = vrot.lane.b32.xlu0 %v1784_v25, %s1655_s9  ;;  %445 = vrot.lane.b32.xlu1 %v1782_v41, %s1655_s9 }
 0x28b   :  { %728 = vrot.lane.b32.xlu0 %v1792_v43, %s1655_s9  ;;  %726 = vrot.lane.b32.xlu1 %v1790_v42, %s1655_s9 }
 0x28f   :  { %395 = vrot.lane.b32.xlu0 %v1782_v41, %s1652_s7  ;;  %393 = vrot.lane.b32.xlu1 %v1784_v25, %s1652_s7 }
 0x293   :  { %694 = vrot.lane.b32.xlu0 %v1790_v42, %s1652_s7  ;;  %692 = vrot.lane.b32.xlu1 %v1792_v43, %s1652_s7 }
 0x297   :  { %351 = vrot.lane.b32.xlu0 %v1782_v41, %s1656_s10  ;;  %349 = vrot.lane.b32.xlu1 %v1784_v25, %s1656_s10 }
 0x29b   :  { %670 = vrot.lane.b32.xlu0 %v1790_v42, %s1656_s10  ;;  %668 = vrot.lane.b32.xlu1 %v1792_v43, %s1656_s10 }
 0x29f   :  { %310 = vrot.lane.b32.xlu0 %v1782_v41, %s1657_s11  ;;  %308 = vrot.lane.b32.xlu1 %v1784_v25, %s1657_s11 }
 0x2a3   :  { %646 = vrot.lane.b32.xlu0 %v1790_v42, %s1657_s11  ;;  %644 = vrot.lane.b32.xlu1 %v1792_v43, %s1657_s11 }
 0x2a7   :  { %266 = vrot.lane.b32.xlu0 %v1782_v41, %s1658_s12  ;;  %263 = vrot.lane.b32.xlu1 %v1784_v25, %s1658_s12 }
 0x2ab   :  { %621 = vrot.lane.b32.xlu0 %v1790_v42, %s1658_s12  ;;  %618 = vrot.lane.b32.xlu1 %v1792_v43, %s1658_s12 }
 0x2af   :  { %575 = vrot.lane.b32.xlu0 %v1784_v25, %s1659_s13  ;;  %573 = vrot.lane.b32.xlu1 %v1782_v41, %s1659_s13 }
 0x2b3   :  { %800 = vrot.lane.b32.xlu0 %v1792_v43, %s1659_s13  ;;  %798 = vrot.lane.b32.xlu1 %v1790_v42, %s1659_s13 }
 0x2b7   :  { %850 = vrot.lane.b32.xlu0 %v1626_v44, %s1653_s2  ;;  %848 = vrot.lane.b32.xlu1 %v1628_v45, %s1653_s2  ;;  %v418_v44 = vrot.slane %v410_v38, %v1851_v53 }
 0x2e9   :  { %v534_v61 = vpop.permute.xlu0 %533  ;;  %v532_v62 = vpop.permute.xlu1 %531 }
 0x2ea   :  { %v536_v2 = vsel %vm535_vm8, %v532_v62, %v534_v61  ;;  %v541_v4 = vsel %vm535_vm8, %v534_v61, %v532_v62 }
 0x2eb   :  { %v559_v5 = vsel %vm1870_vm9, %v536_v2, 0  ;;  %1582 = vmatprep.subr.msk.bf16.mxu0 %vm1874_vm10, %v541_v4 }
 0x2ec   :  { %948 = vmatpush1.bf16.msra.mxu0 %v559_v5 }
 0x2ed   :  { %v777_v10 = vpop.permute.xlu0 %776  ;;  %v775_v11 = vpop.permute.xlu1 %774 }
 0x2ee   :  { %v778_v12 = vsel %vm535_vm8, %v775_v11, %v777_v10  ;;  %v782_v13 = vsel %vm535_vm8, %v777_v10, %v775_v11 }
 0x2ef   :  { %v784_v18 = vsel %vm1870_vm9, %v778_v12, 0  ;;  %1592 = vmatprep.subr.msk.bf16.mxu1 %vm1874_vm10, %v782_v13  ;;  %vm1932_vm9 = vcmp.ne.s16.totalorder %v466_v31, 0  ;;  %vm1936_vm10 = vcmp.ne.s16.totalorder %v470_v32, 0 }
 0x2f0   :  { %1099 = vmatpush1.bf16.msra.mxu1 %v784_v18 }
 0x2f1   :  { %v490_v23 = vpop.permute.xlu0 %489  ;;  %v488_v26 = vpop.permute.xlu1 %487 }
 0x2f2   :  { %v492_v28 = vsel %vm491_vm14, %v488_v26, %v490_v23  ;;  %v497_v29 = vsel %vm491_vm14, %v490_v23, %v488_v26 }
 0x2f3   :  { %v517_v30 = vsel %vm1905_vm15, %v492_v28, 0  ;;  %1583 = vmatprep.subr.msk.bf16.mxu0 %vm1909_vm3, %v497_v29 }
 0x2f4   :  { %950 = vmatpush1.bf16.msra.mxu0 %v517_v30 }
 0x2f5   :  { %v753_v33 = vpop.permute.xlu0 %752  ;;  %v751_v34 = vpop.permute.xlu1 %750 }
 0x2f6   :  { %v754_v14 = vsel %vm491_vm14, %v751_v34, %v753_v33  ;;  %v758_v35 = vsel %vm491_vm14, %v753_v33, %v751_v34  ;;  %vm1952_vm14 = vmand %vm30_vm13, %vm1885_vm11 }
 0x2f7   :  { %v760_v16 = vsel %vm1905_vm15, %v754_v14, 0  ;;  %1593 = vmatprep.subr.msk.bf16.mxu1 %vm1909_vm3, %v758_v35  ;;  %vm367_vm15 = vmpackc.low %vm1889_vm12, %vm1952_vm14  ;;  %vm397_vm3 = vcmask 7168  }
 0x2f8   :  { %1101 = vmatpush1.bf16.msra.mxu1 %v760_v16  ;;  %v368_v59 = vsel %vm367_vm15, 65537, %v1650_v3 }
 0x2f9   :  { %v448_v37 = vpop.permute.xlu0 %447  ;;  %v446_v17 = vpop.permute.xlu1 %445  ;;  %v372_v62 = vrot.slane %v368_v59, %v1849_v52 }
 0x2fa   :  { %v450_v20 = vsel %vm449_vm7, %v446_v17, %v448_v37  ;;  %v455_v39 = vsel %vm449_vm7, %v448_v37, %v446_v17 }
 0x2fb   :  { %v473_v24 = vsel %vm1932_vm9, %v450_v20, 0  ;;  %1584 = vmatprep.subr.msk.bf16.mxu0 %vm1936_vm10, %v455_v39  ;;  %vm1998_vm14 = vcmp.ne.s16.totalorder %v372_v62, 0 }
 0x2fc   :  { %952 = vmatpush1.bf16.msra.mxu0 %v473_v24 }
 0x2fd   :  { %v729_v45 = vpop.permute.xlu0 %728  ;;  %953 = vmatprep.subr.bf16.mxu0 %v1784_v25  ;;  %v727_v46 = vpop.permute.xlu1 %726 }
 0x2fe   :  { %v730_v49 = vsel %vm449_vm7, %v727_v46, %v729_v45  ;;  %v734_v50 = vsel %vm449_vm7, %v729_v45, %v727_v46  ;;  %vm1974_vm7 = vcmp.ne.s16.totalorder %v418_v44, 0 }
 0x2ff   :  { %v736_v51 = vsel %vm1932_vm9, %v730_v49, 0  ;;  %1594 = vmatprep.subr.msk.bf16.mxu1 %vm1936_vm10, %v734_v50  ;;  %vm323_vm9 = vmpackc.low %vm1660_vm2, %vm30_vm13  ;;  %vm353_vm10 = vcmask 121856  }
 0x300   :  { %954 = vmatpush1.bf16.msra.mxu0 %v1782_v41  ;;  %1103 = vmatpush1.bf16.msra.mxu1 %v736_v51  ;;  %v324_v12 = vsel %vm323_vm9, 65537, %v1650_v3  ;;  %vm2017_vm2 = vmand %vm30_vm13, %vm1858_vm5 }
 0x301   :  { %v396_v57 = vpop.permute.xlu0 %395  ;;  %1104 = vmatprep.subr.bf16.mxu1 %v1792_v43  ;;  %v394_v58 = vpop.permute.xlu1 %393  ;;  %v376_v43 = vrot.slane %v368_v59, %v1851_v53  ;;  %v328_v23 = vrot.slane %v324_v12, %v1849_v52  ;;  %v332_v26 = vrot.slane %v324_v12, %v1851_v53 }
 0x302   :  { %v398_v60 = vsel %vm397_vm3, %v396_v57, %v394_v58  ;;  %v403_v61 = vsel %vm397_vm3, %v394_v58, %v396_v57 }
 0x303   :  { %v421_v41 = vsel %vm1970_vm6, %v403_v61, 0  ;;  %1585 = vmatprep.subr.msk.bf16.mxu0 %vm1974_vm7, %v398_v60  ;;  %vm2002_vm15 = vcmp.ne.s16.totalorder %v376_v43, 0  ;;  %vm2033_vm5 = vcmp.ne.s16.totalorder %v328_v23, 0  ;;  %vm2037_vm13 = vcmp.ne.s16.totalorder %v332_v26, 0 }
 0x304   :  { %956 = vmatpush1.bf16.msra.mxu0 %v421_v41  ;;  %1105 = vmatpush1.bf16.msra.mxu1 %v1790_v42 }
 0x305   :  { %v695_v1 = vpop.permute.xlu0 %694  ;;  %v693_v2 = vpop.permute.xlu1 %692 }
 0x306   :  { %v696_v4 = vsel %vm397_vm3, %v695_v1, %v693_v2  ;;  %v700_v5 = vsel %vm397_vm3, %v693_v2, %v695_v1  ;;  %vm282_vm3 = vmpackc.low %vm1853_vm4, %vm2017_vm2 }
 0x307   :  { %v702_v8 = vsel %vm1970_vm6, %v700_v5, 0  ;;  %1595 = vmatprep.subr.msk.bf16.mxu1 %vm1974_vm7, %v696_v4  ;;  %v283_v54 = vsel %vm282_vm3, 65537, %v1650_v3  ;;  %vm2052_vm4 = vmand %vm33_vm1, %vm1889_vm12  ;;  %vm268_vm1 = vcmask 138240  }
 0x308   :  { %1107 = vmatpush1.bf16.msra.mxu1 %v702_v8  ;;  %v287_v36 = vrot.slane %v283_v54, %v1849_v52  ;;  %v291_v15 = vrot.slane %v283_v54, %v1851_v53  ;;  %vm591_vm6 = vmpackc.low %vm2052_vm4, %vm1885_vm11  ;;  %vm577_vm11 = vcmask 908288  }
 0x309   :  { %v352_v10 = vpop.permute.xlu0 %351  ;;  %v350_v11 = vpop.permute.xlu1 %349  ;;  %v592_v40 = vsel %vm591_vm6, 65537, %v1650_v3 }
 0x30a   :  { %v354_v13 = vsel %vm353_vm10, %v352_v10, %v350_v11  ;;  %v359_v18 = vsel %vm353_vm10, %v350_v11, %v352_v10  ;;  %vm2068_vm12 = vcmp.ne.s16.totalorder %v287_v36, 0  ;;  %vm2072_vm7 = vcmp.ne.s16.totalorder %v291_v15, 0 }
 0x30b   :  { %v379_v19 = vsel %vm1998_vm14, %v359_v18, 0  ;;  %1586 = vmatprep.subr.msk.bf16.mxu0 %vm2002_vm15, %v354_v13  ;;  %v596_v46 = vrot.slane %v592_v40, %v1849_v52  ;;  %v600_v49 = vrot.slane %v592_v40, %v1851_v53 }
 0x30c   :  { %958 = vmatpush1.bf16.msra.mxu0 %v379_v19 }
 0x30d   :  { %v671_v27 = vpop.permute.xlu0 %670  ;;  %v669_v28 = vpop.permute.xlu1 %668  ;;  %vm601_vm9 = vcmp.ne.s16.totalorder %v596_v46, 0 }
 0x30e   :  { %v672_v29 = vsel %vm353_vm10, %v671_v27, %v669_v28  ;;  %v676_v30 = vsel %vm353_vm10, %v669_v28, %v671_v27  ;;  %vm602_vm10 = vcmp.ne.s16.totalorder %v600_v49, 0 }
 0x30f   :  { %v678_v47 = vsel %vm1998_vm14, %v676_v30, 0  ;;  %1596 = vmatprep.subr.msk.bf16.mxu1 %vm2002_vm15, %v672_v29 }
 0x310   :  { %1109 = vmatpush1.bf16.msra.mxu1 %v678_v47 }
 0x311   :  { %v311_v32 = vpop.permute.xlu0 %310  ;;  %v309_v33 = vpop.permute.xlu1 %308 }
 0x312   :  { %v313_v34 = vsel %vm54_vm0, %v311_v32, %v309_v33  ;;  %v317_v14 = vsel %vm54_vm0, %v309_v33, %v311_v32 }
 0x313   :  { %v335_v35 = vsel %vm2033_vm5, %v317_v14, 0  ;;  %1587 = vmatprep.subr.msk.bf16.mxu0 %vm2037_vm13, %v313_v34  ;;  %v1661_v14 = vmov 2  }
 0x314   :  { %960 = vmatpush1.bf16.msra.mxu0 %v335_v35  ;;  %1619 = vset.pattern.permute.xlu1 %v1661_v14 }
 0x315   :  { %v647_v37 = vpop.permute.xlu0 %646  ;;  %v645_v17 = vpop.permute.xlu1 %644 }
 0x316   :  { %v648_v38 = vsel %vm54_vm0, %v647_v37, %v645_v17  ;;  %v652_v20 = vsel %vm54_vm0, %v645_v17, %v647_v37 }
 0x317   :  { %v654_v48 = vsel %vm2033_vm5, %v652_v20, 0  ;;  %1597 = vmatprep.subr.msk.bf16.mxu1 %vm2037_vm13, %v648_v38 }
 0x318   :  { %1111 = vmatpush1.bf16.msra.mxu1 %v654_v48 }
 0x319   :  { %v267_v6 = vpop.permute.xlu0 %266  ;;  %v264_v24 = vpop.permute.xlu1 %263 }
 0x31a   :  { %v269_v22 = vsel %vm268_vm1, %v267_v6, %v264_v24  ;;  %v274_v44 = vsel %vm268_vm1, %v264_v24, %v267_v6 }
 0x31b   :  { %v294_v45 = vsel %vm2068_vm12, %v274_v44, 0  ;;  %1588 = vmatprep.subr.msk.bf16.mxu0 %vm2072_vm7, %v269_v22 }
 0x31c   :  { %962 = vmatpush1.bf16.msra.mxu0 %v294_v45 }
 0x31d   :  { %v622_v50 = vpop.permute.xlu0 %621  ;;  %v619_v51 = vpop.permute.xlu1 %618 }
 0x31e   :  { %v623_v25 = vsel %vm268_vm1, %v622_v50, %v619_v51  ;;  %v627_v55 = vsel %vm268_vm1, %v619_v51, %v622_v50 }
 0x31f   :  { %v629_v57 = vsel %vm2068_vm12, %v627_v55, 0  ;;  %1598 = vmatprep.subr.msk.bf16.mxu1 %vm2072_vm7, %v623_v25 }
 0x320   :  { %1113 = vmatpush1.bf16.msra.mxu1 %v629_v57 }
 0x321   :  { %v576_v58 = vpop.permute.xlu0 %575  ;;  %v574_v52 = vpop.permute.xlu1 %573 }
 0x322   :  { %v578_v59 = vsel %vm577_vm11, %v574_v52, %v576_v58  ;;  %v583_v53 = vsel %vm577_vm11, %v576_v58, %v574_v52  ;;  %v1662_v58 = vmov 3  }
 0x323   :  { %v603_v60 = vsel %vm601_vm9, %v578_v59, 0  ;;  %1589 = vmatprep.subr.msk.bf16.mxu0 %vm602_vm10, %v583_v53  ;;  %1621 = vset.pattern.permute.xlu0 %v1662_v58 }
 0x324   :  { %978 = vmatpush2.bf16.msra.mxu0 %v603_v60 }
 0x325   :  { %v801_v61 = vpop.permute.xlu0 %800  ;;  %v799_v41 = vpop.permute.xlu1 %798 }
 0x326   :  { %v802_v62 = vsel %vm577_vm11, %v799_v41, %v801_v61  ;;  %v806_v43 = vsel %vm577_vm11, %v801_v61, %v799_v41 }
 0x327   :  { %v808_v1 = vsel %vm601_vm9, %v802_v62, 0  ;;  %1599 = vmatprep.subr.msk.bf16.mxu1 %vm602_vm10, %v806_v43 }
 0x328   :  { %1129 = vmatpush2.bf16.msra.mxu1 %v808_v1  ;;  %v1629_v1 = vld [vmem:[%s2258_s1 + $0x4] ss:$8 sps:$4 sm:$0xff]  }
 0x329   :  { %v851_v2 = vpop.permute.xlu0 %850  ;;  %v849_v4 = vpop.permute.xlu1 %848 }
 0x32a   :  { %v852_v5 = vsel %vm535_vm8, %v849_v4, %v851_v2  ;;  %1549 = vmatprep.mubr.msk.bf16.mxu0 %vm54_vm0, %v851_v2  ;;  %1568 = vmatprep.mubr.msk.bf16.mxu1 %vm54_vm0, %v851_v2 }
 0x32b   :  { %980 = vmatmul.mubr.bf16.vlgmr.msra.gmra.mxu0 %v852_v5  ;;  %1131 = vmatmul.mubr.bf16.vlgmr.msra.gmra.mxu1 %v852_v5 }
 0x32c   :  { %1299 = vmatprep.mubr.bf16.mxu0 %v1650_v3  ;;  %1342 = vmatprep.mubr.bf16.mxu1 %v1650_v3 }
 0x3eb   :  { %v2096_v8 = vpop.f32.mrf.mxu0  ;;  %v2098_v42 = vpop.f32.mrf.mxu1 }
 0x3ec   :  { %v1157_v19 = vmul.f32 %v2096_v8, %v2096_v8  ;;  %v1169_v29 = vmul.f32 %v2098_v42, %v2098_v42 }
 0x3ed   :  { %v2100_v9 = vpop.f32.mrf.mxu0  ;;  %v2102_v10 = vpop.f32.mrf.mxu1 }
 0x3ee   :  { %v1149_v11 = vadd.f32 %v2102_v10, %v2098_v42  ;;  %v1141_v12 = vadd.f32 %v2100_v9, %v2096_v8  ;;  %v1158_v13 = vmul.f32 %v2100_v9, %v2100_v9  ;;  %v1170_v27 = vmul.f32 %v2102_v10, %v2102_v10 }
 0x3ef   :  { %v2110_v18 = vpop.f32.mrf.mxu0  ;;  %v2112_v3 = vpop.f32.mrf.mxu1 }
 0x3f0   :  { %1150 = vadd.xlane.f32.xlu0 %v1149_v11  ;;  %1142 = vadd.xlane.f32.xlu1 %v1141_v12  ;;  %v1161_v23 = vadd.f32 %v1158_v13, %v1157_v19  ;;  %v1173_v30 = vadd.f32 %v1170_v27, %v1169_v29  ;;  %v1159_v31 = vmul.f32 %v2110_v18, %v2110_v18 }
 0x3f1   :  { %v2116_v21 = vpop.f32.mrf.mxu0  ;;  %v2122_v28 = vpop.f32.mrf.mxu1  ;;  %v1171_v54 = vmul.f32 %v2112_v3, %v2112_v3 }
 0x3f2   :  { %v1144_v26 = vadd.f32 %v2116_v21, %v2110_v18  ;;  %v1152_v47 = vadd.f32 %v2122_v28, %v2112_v3  ;;  %v1160_v56 = vmul.f32 %v2116_v21, %v2116_v21  ;;  %v1172_v33 = vmul.f32 %v2122_v28, %v2122_v28 }
 0x3f4   :  { %1162 = vadd.xlane.f32.xlu1 %v1161_v23  ;;  %1145 = vadd.xlane.f32.xlu0 %v1144_v26  ;;  %v1164_v32 = vadd.f32 %v1160_v56, %v1159_v31  ;;  %v1176_v34 = vadd.f32 %v1172_v33, %v1171_v54 }
 0x3f8   :  { %1174 = vadd.xlane.f32.xlu1 %v1173_v30  ;;  %1153 = vadd.xlane.f32.xlu0 %v1152_v47 }
 0x3fc   :  { %1165 = vadd.xlane.f32.xlu0 %v1164_v32 }
 0x400   :  { %1177 = vadd.xlane.f32.xlu0 %v1176_v34 }
 0x479   :  { %v1151_v35 = vpop.xlane.xlu0 %1150  ;;  %v1143_v16 = vpop.xlane.xlu1 %1142 }
 0x47a   :  { %v1155_v36 = vadd.f32 %v1151_v35, %v1143_v16 }
 0x47c   :  { %v1181_v17 = vmul.f32 0.001953125, %v1155_v36 }
 0x47d   :  { %v1163_v15 = vpop.xlane.xlu1 %1162  ;;  %v1146_v37 = vpop.xlane.xlu0 %1145 }
 0x47e   :  { %v1185_v7 = vmul.f32 %v1181_v17, %v1181_v17 }
 0x481   :  { %v1175_v38 = vpop.xlane.xlu1 %1174  ;;  %v1154_v20 = vpop.xlane.xlu0 %1153 }
 0x482   :  { %v1179_v48 = vadd.f32 %v1175_v38, %v1163_v15  ;;  %v1156_v6 = vadd.f32 %v1154_v20, %v1146_v37 }
 0x484   :  { %v1183_v39 = vmul.f32 0.001953125, %v1179_v48  ;;  %v1182_v44 = vmul.f32 0.001953125, %v1156_v6 }
 0x485   :  { %v1166_v24 = vpop.xlane.xlu0 %1165 }
 0x486   :  { %v1187_v40 = vsub.f32 %v1183_v39, %v1185_v7  ;;  %v1186_v50 = vmul.f32 %v1182_v44, %v1182_v44 }
 0x488   :  { %v1189_v22 = vmax.f32 %v1187_v40, 0.0 }
 0x489   :  { %v1178_v45 = vpop.xlane.xlu0 %1177 }
 0x48a   :  { %v1191_v46 = vadd.f32 1e-05, %v1189_v22  ;;  %v1180_v49 = vadd.f32 %v1178_v45, %v1166_v24 }
 0x48c   :  { %1634 = vrsqrt.f32 %v1191_v46  ;;  %v1184_v51 = vmul.f32 0.001953125, %v1180_v49 }
 0x48e   :  { %v1188_v25 = vsub.f32 %v1184_v51, %v1186_v50 }
 0x490   :  { %v1190_v55 = vmax.f32 %v1188_v25, 0.0 }
 0x492   :  { %v1192_v57 = vadd.f32 1e-05, %v1190_v55 }
 0x494   :  { %1636 = vrsqrt.f32 %v1192_v57 }
 0x499   :  { %v1635_v52 = vpop.eup %1634 }
 0x49a   :  { %v1195_v59 = vmul.f32 %v1635_v52, %v1761_v63 }
 0x49c   :  { %v1197_v53 = vmul.f32 %v1195_v59, %v1181_v17 }
 0x49e   :  { %1201 = vrot.lane.b32.xlu1 %v1197_v53, %s1652_s7 }
 0x4a1   :  { %v1637_v60 = vpop.eup %1636 }
 0x4a2   :  { %1211 = vperm.xlu1 %1619, %v1195_v59   ;;  %v1196_v61 = vmul.f32 %v1637_v60, %v1766_v0 }
 0x4a4   :  { %v1198_v41 = vmul.f32 %v1196_v61, %v1182_v44 }
 0x4a6   :  { %1216 = vperm.xlu1 %1619, %v1196_v61   ;;  %1203 = vrot.lane.b32.xlu0 %v1198_v41, %s1652_s7 }
 0x4aa   :  { %1620 = vset.pattern.permute.xlu1 %v1662_v58 }
 0x510   :  { %v1202_v62 = vpop.permute.xlu1 %1201 }
 0x511   :  { %v1207_v43 = vsub.f32 %v1761_v63, %v1202_v62  ;;  %v1664_v62 = vmov 4  }
 0x513   :  { %1225 = vperm.xlu1 %1620, %v1207_v43  }
 0x517   :  { %1262 = vrot.lane.b32.xlu1 %v1629_v1, %s1663_s20 }
 0x518   :  { %v1204_v2 = vpop.permute.xlu0 %1203  ;;  %1622 = vset.pattern.permute.xlu1 %v1664_v62 }
 0x519   :  { %v1208_v4 = vsub.f32 %v1766_v0, %v1204_v2 }
 0x51b   :  { %1230 = vperm.xlu0 %1621, %v1208_v4  }
 0x51d   :  { %v1212_v5 = vpop.permute.xlu1 %1211 }
 0x51e   :  { %v1219_v13 = vmul.f32 %v1212_v5, %v2096_v8  ;;  %v1220_v19 = vmul.f32 %v1212_v5, %v2100_v9  ;;  %v1243_v23 = vmul.f32 %v1212_v5, %v2098_v42  ;;  %v1244_v26 = vmul.f32 %v1212_v5, %v2102_v10 }
 0x521   :  { %v1217_v11 = vpop.permute.xlu1 %1216 }
 0x522   :  { %v1221_v56 = vmul.f32 %v1217_v11, %v2110_v18  ;;  %v1222_v31 = vmul.f32 %v1217_v11, %v2116_v21  ;;  %v1245_v32 = vmul.f32 %v1217_v11, %v2112_v3  ;;  %v1246_v33 = vmul.f32 %v1217_v11, %v2122_v28 }
 0x58e   :  { %v1226_v12 = vpop.permute.xlu1 %1225 }
 0x58f   :  { %v1233_v27 = vadd.f32 %v1226_v12, %v1219_v13  ;;  %v1234_v29 = vadd.f32 %v1226_v12, %v1220_v19  ;;  %v1247_v30 = vadd.f32 %v1243_v23, %v1226_v12  ;;  %v1248_v47 = vadd.f32 %v1244_v26, %v1226_v12 }
 0x591   :  { %v1237_v42 = vmax.f32 %v1233_v27, 0.0  ;;  %v1251_v35 = vmax.f32 %v1247_v30, 0.0  ;;  %v1238_v10 = vmax.f32 %v1234_v29, 0.0  ;;  %v1252_v16 = vmax.f32 %v1248_v47, 0.0 }
 0x592   :  { %v1263_v3 = vpop.permute.xlu1 %1262 }
 0x596   :  { %v1231_v54 = vpop.permute.xlu0 %1230 }
 0x597   :  { %v1235_v8 = vadd.f32 %v1231_v54, %v1221_v56  ;;  %v1236_v34 = vadd.f32 %v1231_v54, %v1222_v31  ;;  %v1249_v9 = vadd.f32 %v1245_v32, %v1231_v54  ;;  %v1250_v14 = vadd.f32 %v1246_v33, %v1231_v54 }
 0x599   :  { %v1239_v36 = vmax.f32 %v1235_v8, 0.0  ;;  %v1253_v15 = vmax.f32 %v1249_v9, 0.0  ;;  %v1240_v37 = vmax.f32 %v1236_v34, 0.0  ;;  %v1254_v17 = vmax.f32 %v1250_v14, 0.0 }
 0x59b   :  { %v1242_v18 = vpack.c.bf16 %v1240_v37, %v1238_v10  ;;  %v1256_v38 = vpack.c.bf16 %v1254_v17, %v1252_v16  ;;  %v1241_v21 = vpack.c.bf16 %v1239_v36, %v1237_v42  ;;  %v1255_v20 = vpack.c.bf16 %v1253_v15, %v1251_v35 }
 0x59c   :  { %v1665_v42 = vmov 5  }
 0x59d   :  { %1281 = vmatprep.subr.bf16.mxu0 %v1242_v18  ;;  %1324 = vmatprep.subr.bf16.mxu1 %v1256_v38 }
 0x59e   :  { %1282 = vmatpush1.bf16.msra.mxu0 %v1241_v21  ;;  %1325 = vmatpush1.bf16.msra.mxu1 %v1255_v20 }
 0x59f   :  { %1624 = vset.pattern.permute.xlu0 %v1665_v42 }
 0x5a1   :  { %1570 = vmatmul.mubr.msk.bf16.vlgmr.msra.gmra.mxu0 %vm54_vm0, %v1263_v3  ;;  %1571 = vmatmul.mubr.msk.bf16.vlgmr.msra.gmra.mxu1 %vm54_vm0, %v1263_v3 }
 0x661   :  { %v2155_v28 = vpop.f32.mrf.mxu0  ;;  %v2157_v48 = vpop.f32.mrf.mxu1 }
 0x662   :  { %v1369_v45 = vmul.f32 %v2155_v28, %v2155_v28  ;;  %v1381_v55 = vmul.f32 %v2157_v48, %v2157_v48 }
 0x663   :  { %v2159_v7 = vpop.f32.mrf.mxu0  ;;  %v2161_v39 = vpop.f32.mrf.mxu1 }
 0x664   :  { %v1353_v6 = vadd.f32 %v2159_v7, %v2155_v28  ;;  %v1361_v24 = vadd.f32 %v2161_v39, %v2157_v48  ;;  %v1370_v40 = vmul.f32 %v2159_v7, %v2159_v7  ;;  %v1382_v51 = vmul.f32 %v2161_v39, %v2161_v39 }
 0x665   :  { %v2169_v22 = vpop.f32.mrf.mxu0  ;;  %v2171_v44 = vpop.f32.mrf.mxu1 }
 0x666   :  { %1354 = vadd.xlane.f32.xlu1 %v1353_v6  ;;  %1362 = vadd.xlane.f32.xlu0 %v1361_v24  ;;  %v1373_v49 = vadd.f32 %v1370_v40, %v1369_v45  ;;  %v1385_v58 = vadd.f32 %v1382_v51, %v1381_v55  ;;  %v1371_v59 = vmul.f32 %v2169_v22, %v2169_v22 }
 0x667   :  { %v2175_v46 = vpop.f32.mrf.mxu0  ;;  %v2181_v25 = vpop.f32.mrf.mxu1  ;;  %v1383_v61 = vmul.f32 %v2171_v44, %v2171_v44 }
 0x668   :  { %v1356_v50 = vadd.f32 %v2175_v46, %v2169_v22  ;;  %v1372_v57 = vmul.f32 %v2175_v46, %v2175_v46  ;;  %v1364_v52 = vadd.f32 %v2181_v25, %v2171_v44  ;;  %v1384_v53 = vmul.f32 %v2181_v25, %v2181_v25 }
 0x66a   :  { %1374 = vadd.xlane.f32.xlu1 %v1373_v49  ;;  %1357 = vadd.xlane.f32.xlu0 %v1356_v50  ;;  %v1376_v60 = vadd.f32 %v1372_v57, %v1371_v59  ;;  %v1388_v41 = vadd.f32 %v1384_v53, %v1383_v61 }
 0x66e   :  { %1386 = vadd.xlane.f32.xlu1 %v1385_v58  ;;  %1365 = vadd.xlane.f32.xlu0 %v1364_v52 }
 0x672   :  { %1377 = vadd.xlane.f32.xlu0 %v1376_v60 }
 0x676   :  { %1389 = vadd.xlane.f32.xlu0 %v1388_v41 }
 0x6ef   :  { %v1355_v43 = vpop.xlane.xlu1 %1354  ;;  %v1363_v1 = vpop.xlane.xlu0 %1362 }
 0x6f0   :  { %v1367_v2 = vadd.f32 %v1363_v1, %v1355_v43 }
 0x6f2   :  { %v1393_v11 = vmul.f32 0.001953125, %v1367_v2 }
 0x6f3   :  { %v1375_v4 = vpop.xlane.xlu1 %1374  ;;  %v1358_v5 = vpop.xlane.xlu0 %1357 }
 0x6f4   :  { %v1397_v23 = vmul.f32 %v1393_v11, %v1393_v11 }
 0x6f7   :  { %v1387_v12 = vpop.xlane.xlu1 %1386  ;;  %v1366_v13 = vpop.xlane.xlu0 %1365 }
 0x6f8   :  { %v1391_v19 = vadd.f32 %v1387_v12, %v1375_v4  ;;  %v1368_v27 = vadd.f32 %v1366_v13, %v1358_v5  ;;  %v1646_v13 = vld [vmem:[%s2257_s0 + $0x10] sm:$0xff] }
 0x6fa   :  { %v1395_v26 = vmul.f32 0.001953125, %v1391_v19  ;;  %v1394_v56 = vmul.f32 0.001953125, %v1368_v27 }
 0x6fb   :  { %v1378_v29 = vpop.xlane.xlu0 %1377 }
 0x6fc   :  { %v1399_v30 = vsub.f32 %v1395_v26, %v1397_v23  ;;  %v1398_v54 = vmul.f32 %v1394_v56, %v1394_v56 }
 0x6fe   :  { %v1401_v47 = vmax.f32 %v1399_v30, 0.0 }
 0x6ff   :  { %v1390_v31 = vpop.xlane.xlu0 %1389 }
 0x700   :  { %v1403_v32 = vadd.f32 1e-05, %v1401_v47  ;;  %v1392_v33 = vadd.f32 %v1390_v31, %v1378_v29 }
 0x702   :  { %1638 = vrsqrt.f32 %v1403_v32  ;;  %v1396_v8 = vmul.f32 0.001953125, %v1392_v33 }
 0x704   :  { %v1400_v34 = vsub.f32 %v1396_v8, %v1398_v54 }
 0x706   :  { %v1402_v9 = vmax.f32 %v1400_v34, 0.0 }
 0x708   :  { %v1404_v14 = vadd.f32 1e-05, %v1402_v9 }
 0x70a   :  { %1640 = vrsqrt.f32 %v1404_v14 }
 0x70f   :  { %v1639_v35 = vpop.eup %1638 }
 0x710   :  { %v1407_v10 = vmul.f32 %v1639_v35, %v1761_v63 }
 0x712   :  { %v1409_v16 = vmul.f32 %v1407_v10, %v1393_v11 }
 0x714   :  { %1413 = vrot.lane.b32.xlu1 %v1409_v16, %s1652_s7 }
 0x717   :  { %v1641_v36 = vpop.eup %1640 }
 0x718   :  { %1423 = vperm.xlu1 %1622, %v1407_v10   ;;  %v1408_v15 = vmul.f32 %v1641_v36, %v1766_v0 }
 0x71a   :  { %v1410_v37 = vmul.f32 %v1408_v15, %v1394_v56 }
 0x71c   :  { %1428 = vperm.xlu1 %1622, %v1408_v15   ;;  %1415 = vrot.lane.b32.xlu0 %v1410_v37, %s1652_s7 }
 0x720   :  { %1623 = vset.pattern.permute.xlu1 %v1665_v42 }
 0x786   :  { %v1414_v17 = vpop.permute.xlu1 %1413 }
 0x787   :  { %v1419_v18 = vsub.f32 %v1761_v63, %v1414_v17 }
 0x789   :  { %1437 = vperm.xlu1 %1623, %v1419_v18  }
 0x78e   :  { %v1416_v38 = vpop.permute.xlu0 %1415 }
 0x78f   :  { %v1420_v21 = vsub.f32 %v1766_v0, %v1416_v38  ;;  %v1642_v0 = vld [vmem:[%s2257_s0] sm:$0xff] }
 0x791   :  { %1442 = vperm.xlu0 %1624, %v1420_v21  }
 0x793   :  { %v1424_v20 = vpop.permute.xlu1 %1423 }
 0x794   :  { %v1431_v6 = vmul.f32 %v1424_v20, %v2155_v28  ;;  %v1432_v24 = vmul.f32 %v1424_v20, %v2159_v7  ;;  %v1461_v40 = vmul.f32 %v1424_v20, %v2157_v48  ;;  %v1462_v45 = vmul.f32 %v1424_v20, %v2161_v39  ;;  %v1643_v28 = vld [vmem:[%s2257_s0 + $0x8] sm:$0xff]  ;;  %v1644_v48 = vld [vmem:[%s2257_s0 + $0x20] sm:$0xff] }
 0x795   :  { %v1645_v39 = vld [vmem:[%s2257_s0 + $0x28] sm:$0xff] }
 0x797   :  { %v1429_v3 = vpop.permute.xlu1 %1428 }
 0x798   :  { %v1433_v41 = vmul.f32 %v1429_v3, %v2169_v22  ;;  %v1434_v62 = vmul.f32 %v1429_v3, %v2175_v46  ;;  %v1463_v43 = vmul.f32 %v1429_v3, %v2171_v44  ;;  %v1464_v1 = vmul.f32 %v1429_v3, %v2181_v25  ;;  %v1647_v22 = vld [vmem:[%s2257_s0 + $0x18] sm:$0xff]  ;;  %v1648_v44 = vld [vmem:[%s2257_s0 + $0x30] sm:$0xff] }
 0x799   :  { %v1649_v25 = vld [vmem:[%s2257_s0 + $0x38] sm:$0xff] }
 0x804   :  { %v1438_v49 = vpop.permute.xlu1 %1437 }
 0x805   :  { %v1445_v50 = vadd.f32 %v1438_v49, %v1431_v6  ;;  %v1446_v51 = vadd.f32 %v1438_v49, %v1432_v24  ;;  %v1465_v55 = vadd.f32 %v1461_v40, %v1438_v49  ;;  %v1466_v63 = vadd.f32 %v1462_v45, %v1438_v49 }
 0x807   :  { %v1449_v57 = vadd.f32 %v1642_v0, %v1445_v50  ;;  %v1450_v58 = vadd.f32 %v1643_v28, %v1446_v51  ;;  %v1469_v7 = vadd.f32 %v1644_v48, %v1465_v55  ;;  %v1470_v52 = vadd.f32 %v1645_v39, %v1466_v63 }
 0x809   :  { %v1453_v59 = vmax.f32 %v1449_v57, 0.0  ;;  %v1454_v53 = vmax.f32 %v1450_v58, 0.0  ;;  %v1473_v60 = vmax.f32 %v1469_v7, 0.0  ;;  %v1474_v61 = vmax.f32 %v1470_v52, 0.0 }
 0x80b   :  { %1457 = vst [vmem:[%s2260_s3] sm:$0xff] %v1453_v59  ;;  %1458 = vst [vmem:[%s2260_s3 + $0x8] sm:$0xff] %v1454_v53 }
 0x80c   :  { %1572 = vst [vmem:[%s2260_s3 + $0x20] sm:$0xff] %v1473_v60  ;;  %1573 = vst [vmem:[%s2260_s3 + $0x28] sm:$0xff] %v1474_v61  ;;  %v1443_v2 = vpop.permute.xlu0 %1442 }
 0x80d   :  { %v1447_v4 = vadd.f32 %v1443_v2, %v1433_v41  ;;  %v1448_v5 = vadd.f32 %v1443_v2, %v1434_v62  ;;  %v1467_v11 = vadd.f32 %v1463_v43, %v1443_v2  ;;  %v1468_v12 = vadd.f32 %v1464_v1, %v1443_v2 }
 0x80f   :  { %v1451_v19 = vadd.f32 %v1646_v13, %v1447_v4  ;;  %v1452_v23 = vadd.f32 %v1647_v22, %v1448_v5  ;;  %v1471_v46 = vadd.f32 %v1648_v44, %v1467_v11  ;;  %v1472_v26 = vadd.f32 %v1649_v25, %v1468_v12 }
 0x811   :  { %v1455_v27 = vmax.f32 %v1451_v19, 0.0  ;;  %v1456_v29 = vmax.f32 %v1452_v23, 0.0  ;;  %v1475_v30 = vmax.f32 %v1471_v46, 0.0  ;;  %v1476_v47 = vmax.f32 %v1472_v26, 0.0 }
 0x813   :  { %1459 = vst [vmem:[%s2260_s3 + $0x10] sm:$0xff] %v1455_v27  ;;  %1460 = vst [vmem:[%s2260_s3 + $0x18] sm:$0xff] %v1456_v29 }
 0x814   :  { %1574 = vst [vmem:[%s2260_s3 + $0x30] sm:$0xff] %v1475_v30  ;;  %1575 = vst [vmem:[%s2260_s3 + $0x38] sm:$0xff] %v1476_v47 }

</bundles_post_ra>
